<compile_context>
chip_gen: v6e
topology: v6e:2x2x1
jax: 0.10.0
libtpu: 0.0.40
codegen_flags: <defaults>
</compile_context>

<pallas_src>
import math
from functools import partial

import numpy as np
import jax
import jax.numpy as jnp
from jax.experimental import pallas as pl
from jax.experimental.pallas import tpu as pltpu

H_K_SZS = (2, 2, 2, 3, 1, 1)
H_DILS = (1, 2, 4, 8, 1, 1)


def _receptive_field(k_szs, dils):
    return max(1, max((k - 1) * d for k, d in zip(k_szs, dils)))


def _seq_encoder_kernel(k_szs, dils, e_ch, n_h, rf_max, tl, compute_dtype,
                        x_ref, fw_ref, fb_ref, *rest):
    """One (batch row, L tile) grid step.  Activations are (channels, TL)."""
    wg_refs = rest[0:n_h]                  # (e, k*e) gate   (H1) weights
    wl_refs = rest[n_h:2 * n_h]            # (e, k*e) linear (H2) weights
    bg_refs = rest[2 * n_h:3 * n_h]        # (e, 1)
    bl_refs = rest[3 * n_h:4 * n_h]        # (e, 1)
    (m1w_ref, m1b_ref, m2w_ref, m2b_ref, lw_ref, lb_ref,
     out_ref, hist_ref) = rest[4 * n_h:]

    # History carry is (re)initialised at the first L tile of every batch row;
    # zeros == the causal zero padding of the reference convolutions.
    @pl.when(pl.program_id(1) == 0)
    def _():
        hist_ref[...] = jnp.zeros_like(hist_ref)

    x = x_ref[0].astype(jnp.float32)       # (Cin, TL)
    cin = x.shape[0]

    # ---- front_1x1 --------------------------------------------------------
    # Cin is tiny (e.g. 4): an MXU pass with K=Cin is ~3% utilised, so do the
    # pointwise conv as Cin broadcast FMAs on the VPU instead.
    fw = fw_ref[...].astype(jnp.float32)   # (e, Cin)
    if cin <= 8:
        h = fw[:, 0:1] * x[0:1, :]
        for c in range(1, cin):
            h = h + fw[:, c:c + 1] * x[c:c + 1, :]
        h = h + fb_ref[...]
    else:
        h = jnp.dot(fw, x, preferred_element_type=jnp.float32) + fb_ref[...]

    # ---- HighwayDCBlock ----------------------------------------------------
    for m in range(n_h):
        k, d = k_szs[m], dils[m]
        rf = (k - 1) * d
        if rf > 0:
            # [last RF_MAX cols of prev tile's layer-m input | current tile]
            full = jnp.concatenate([hist_ref[m], h], axis=1)   # (e, RF_MAX+TL)
            hist_ref[m] = h[:, tl - rf_max:]                   # carry -> next tile
            taps = []
            for j in range(k):
                s = (k - 1 - j) * d                            # causal shift
                taps.append(h if s == 0
                            else full[:, rf_max - s:rf_max - s + tl])
            xc = jnp.concatenate(taps, axis=0)                 # (k*e, TL)
        else:
            xc = h                                             # 1x1 highway layer
        xc = xc.astype(compute_dtype)
        # Fused tap matmul; separate gate/linear weights keep both results
        # lane-contiguous (no slicing of a 2e-wide accumulator).
        g_pre = jnp.dot(wg_refs[m][...], xc,
                        preferred_element_type=jnp.float32) + bg_refs[m][...]
        lin = jnp.dot(wl_refs[m][...], xc,
                      preferred_element_type=jnp.float32) + bl_refs[m][...]
        g = jax.nn.sigmoid(g_pre)                              # f32 (EUP)
        h = g * lin + (1.0 - g) * h                            # f32 (VPU)

    # ---- mid_1x1 (conv -> ReLU -> conv -> ReLU) and last_1x1 ---------------
    def conv1x1(w_ref, b_ref, v):
        return jnp.dot(w_ref[...], v.astype(compute_dtype),
                       preferred_element_type=jnp.float32) + b_ref[...]

    h = jnp.maximum(conv1x1(m1w_ref, m1b_ref, h), 0.0)
    h = jnp.maximum(conv1x1(m2w_ref, m2b_ref, h), 0.0)
    out = conv1x1(lw_ref, lb_ref, h)

    out_ref[0] = out.astype(out_ref.dtype)                     # (e, TL)


def init_params(key, input_ch, e_ch, k_szs=H_K_SZS, dils=H_DILS,
                dtype=jnp.float32):
    """Random params in the kernel's layout.

    Conversion from PyTorch Conv1d weights (out_ch, in_ch, k):
      front_w = W[:, :, 0]                         -> (e, Cin)
      h_wg[m][:, j*e:(j+1)*e] = W_m[:e, :, j]      (gate / H1 taps)
      h_wl[m][:, j*e:(j+1)*e] = W_m[e:, :, j]      (linear / H2 taps)
      mid*/last = W[:, :, 0]                       -> (e, e)
      all biases reshaped to (out_ch, 1).
    """
    n_h = len(k_szs)
    keys = jax.random.split(key, 8 + 4 * n_h)
    ki = iter(keys)

    def u(shape, fan_in):
        bound = 1.0 / math.sqrt(fan_in)
        return jax.random.uniform(next(ki), shape, dtype, -bound, bound)

    p = {}
    p["front_w"] = u((e_ch, input_ch), input_ch)
    p["front_b"] = u((e_ch, 1), input_ch)
    p["h_wg"] = [u((e_ch, k * e_ch), e_ch * k) for k in k_szs]
    p["h_wl"] = [u((e_ch, k * e_ch), e_ch * k) for k in k_szs]
    p["h_bg"] = [u((e_ch, 1), e_ch * k) for k in k_szs]
    p["h_bl"] = [u((e_ch, 1), e_ch * k) for k in k_szs]
    p["mid1_w"] = u((e_ch, e_ch), e_ch)
    p["mid1_b"] = u((e_ch, 1), e_ch)
    p["mid2_w"] = u((e_ch, e_ch), e_ch)
    p["mid2_b"] = u((e_ch, 1), e_ch)
    p["last_w"] = u((e_ch, e_ch), e_ch)
    p["last_b"] = u((e_ch, 1), e_ch)
    return p


def seq_encoder_forward(x_ncl, params, k_szs=H_K_SZS, dils=H_DILS,
                        compute_dtype=jnp.float32, tile_l=256):
    """x_ncl: (B, Cin, L) NCL -> (B, e_ch, L) NCL (no wrapper transposes)."""
    B, Cin, L = x_ncl.shape
    e_ch = params["front_w"].shape[0]
    n_h = len(k_szs)
    rf_max = _receptive_field(k_szs, dils)

    # L tiling: single tile for short sequences, otherwise 128-aligned tiles
    # (lane-dense output stores).  The history carry needs TL >= rf_max.
    if L <= tile_l:
        tl = max(L, rf_max)
    else:
        assert tile_l % 128 == 0 and tile_l >= rf_max
        tl = tile_l
    l_pad = -(-L // tl) * tl
    n_t = l_pad // tl

    x = x_ncl.astype(jnp.float32)
    if l_pad != L:
        x = jnp.pad(x, ((0, 0), (0, 0), (0, l_pad - L)))

    cd = compute_dtype

    def w(a):   # matmul operands -> compute dtype (bf16 halves VMEM/HBM bytes)
        return a.astype(cd)

    def f(a):   # biases / VPU operands stay f32
        return a.astype(jnp.float32)

    weight_args = (
        [f(params["front_w"]), f(params["front_b"])]
        + [w(a) for a in params["h_wg"]] + [w(a) for a in params["h_wl"]]
        + [f(a) for a in params["h_bg"]] + [f(a) for a in params["h_bl"]]
        + [w(params["mid1_w"]), f(params["mid1_b"]),
           w(params["mid2_w"]), f(params["mid2_b"]),
           w(params["last_w"]), f(params["last_b"])]
    )

    def full_spec(a):
        nd = a.ndim
        return pl.BlockSpec(a.shape, lambda b, i, _nd=nd: (0,) * _nd)

    in_specs = [pl.BlockSpec((1, Cin, tl), lambda b, i: (b, 0, i))]
    in_specs += [full_spec(a) for a in weight_args]
    out_spec = pl.BlockSpec((1, e_ch, tl), lambda b, i: (b, 0, i))

    kernel = partial(_seq_encoder_kernel, tuple(k_szs), tuple(dils), e_ch,
                     n_h, rf_max, tl, cd)

    out = pl.pallas_call(
        kernel,
        out_shape=jax.ShapeDtypeStruct((B, e_ch, l_pad), jnp.float32),
        grid=(B, n_t),
        in_specs=in_specs,
        out_specs=out_spec,
        scratch_shapes=[pltpu.VMEM((n_h, e_ch, rf_max), jnp.float32)],
        compiler_params=pltpu.CompilerParams(
            dimension_semantics=("parallel", "arbitrary"),
            vmem_limit_bytes=64 * 1024 * 1024),
    )(x, *weight_args)

    return out[:, :, :L]


def reference_forward(x_ncl, params, k_szs=H_K_SZS, dils=H_DILS):
    """Pure-JAX reference with identical semantics (correctness check)."""
    x = x_ncl.astype(jnp.float32)
    h = jnp.einsum("ec,bcl->bel", params["front_w"], x) + params["front_b"][None]
    B, e, L = h.shape
    for m, (k, d) in enumerate(zip(k_szs, dils)):
        rf = (k - 1) * d
        hp = jnp.pad(h, ((0, 0), (0, 0), (rf, 0))) if rf > 0 else h
        taps = [hp[:, :, rf - (k - 1 - j) * d: rf - (k - 1 - j) * d + L]
                for j in range(k)]
        xc = jnp.concatenate(taps, axis=1)                      # (B, k*e, L)
        g = jax.nn.sigmoid(
            jnp.einsum("ef,bfl->bel", params["h_wg"][m], xc) + params["h_bg"][m][None])
        lin = jnp.einsum("ef,bfl->bel", params["h_wl"][m], xc) + params["h_bl"][m][None]
        h = g * lin + (1.0 - g) * h
    h = jnp.maximum(
        jnp.einsum("ef,bfl->bel", params["mid1_w"], h) + params["mid1_b"][None], 0.0)
    h = jnp.maximum(
        jnp.einsum("ef,bfl->bel", params["mid2_w"], h) + params["mid2_b"][None], 0.0)
    h = jnp.einsum("ef,bfl->bel", params["last_w"], h) + params["last_b"][None]
    return h


if __name__ == "__main__":
    key = jax.random.PRNGKey(0)
    B, Cin, L, e_ch = 2, 4, 16, 32
    kx, kp = jax.random.split(key)
    x = jax.random.normal(kx, (B, Cin, L), jnp.float32)   # NCL like the module
    params = init_params(kp, Cin, e_ch)

    # f32 path (single L tile at this toy length)
    y = jax.block_until_ready(seq_encoder_forward(x, params))
    assert y.shape == (B, e_ch, L)
    y_ref = jax.block_until_ready(reference_forward(x, params))
    np.testing.assert_allclose(np.asarray(y), np.asarray(y_ref),
                               rtol=2e-4, atol=2e-4)

    # bf16 matmul operands, f32 accumulation / element-wise
    y_bf16 = jax.block_until_ready(
        seq_encoder_forward(x, params, compute_dtype=jnp.bfloat16))
    np.testing.assert_allclose(np.asarray(y_bf16), np.asarray(y_ref),
                               rtol=1e-1, atol=1e-1)

    # Multi-tile path: exercises the cross-tile history carry (L > tile_l).
    x2 = jax.random.normal(jax.random.PRNGKey(1), (B, Cin, 640), jnp.float32)
    y2 = jax.block_until_ready(seq_encoder_forward(x2, params, tile_l=256))
    y2_ref = jax.block_until_ready(reference_forward(x2, params))
    np.testing.assert_allclose(np.asarray(y2), np.asarray(y2_ref),
                               rtol=2e-4, atol=2e-4)

    print("KERNEL_OK")
</pallas_src>

<mosaic_0001>
module attributes {stable_mosaic.version = 11 : i64} {
  func.func @_seq_encoder_kernel(%arg0: i32, %arg1: i32, %arg2: memref<1x4x16xf32, #tpu.memory_space<vmem>>, %arg3: memref<32x4xf32, #tpu.memory_space<vmem>>, %arg4: memref<32x1xf32, #tpu.memory_space<vmem>>, %arg5: memref<32x64xf32, #tpu.memory_space<vmem>>, %arg6: memref<32x64xf32, #tpu.memory_space<vmem>>, %arg7: memref<32x64xf32, #tpu.memory_space<vmem>>, %arg8: memref<32x96xf32, #tpu.memory_space<vmem>>, %arg9: memref<32x32xf32, #tpu.memory_space<vmem>>, %arg10: memref<32x32xf32, #tpu.memory_space<vmem>>, %arg11: memref<32x64xf32, #tpu.memory_space<vmem>>, %arg12: memref<32x64xf32, #tpu.memory_space<vmem>>, %arg13: memref<32x64xf32, #tpu.memory_space<vmem>>, %arg14: memref<32x96xf32, #tpu.memory_space<vmem>>, %arg15: memref<32x32xf32, #tpu.memory_space<vmem>>, %arg16: memref<32x32xf32, #tpu.memory_space<vmem>>, %arg17: memref<32x1xf32, #tpu.memory_space<vmem>>, %arg18: memref<32x1xf32, #tpu.memory_space<vmem>>, %arg19: memref<32x1xf32, #tpu.memory_space<vmem>>, %arg20: memref<32x1xf32, #tpu.memory_space<vmem>>, %arg21: memref<32x1xf32, #tpu.memory_space<vmem>>, %arg22: memref<32x1xf32, #tpu.memory_space<vmem>>, %arg23: memref<32x1xf32, #tpu.memory_space<vmem>>, %arg24: memref<32x1xf32, #tpu.memory_space<vmem>>, %arg25: memref<32x1xf32, #tpu.memory_space<vmem>>, %arg26: memref<32x1xf32, #tpu.memory_space<vmem>>, %arg27: memref<32x1xf32, #tpu.memory_space<vmem>>, %arg28: memref<32x1xf32, #tpu.memory_space<vmem>>, %arg29: memref<32x32xf32, #tpu.memory_space<vmem>>, %arg30: memref<32x1xf32, #tpu.memory_space<vmem>>, %arg31: memref<32x32xf32, #tpu.memory_space<vmem>>, %arg32: memref<32x1xf32, #tpu.memory_space<vmem>>, %arg33: memref<32x32xf32, #tpu.memory_space<vmem>>, %arg34: memref<32x1xf32, #tpu.memory_space<vmem>>, %arg35: memref<1x32x16xf32, #tpu.memory_space<vmem>>, %arg36: memref<6x32x16xf32, #tpu.memory_space<vmem>>) attributes {dimension_semantics = [#tpu.dimension_semantics<parallel>, #tpu.dimension_semantics<arbitrary>], iteration_bounds = array<i64: 2, 1>, scalar_prefetch = 0 : i64, scratch_operands = 1 : i64, tpu.core_type = #tpu.core_type<tc>, window_params = [{transform_indices = @transform_0, window_bounds = array<i64: 1, 4, 16>}, {pipeline_mode = #tpu.pipeline_mode<synchronous>, transform_indices = @transform_1, window_bounds = array<i64: 32, 4>}, {pipeline_mode = #tpu.pipeline_mode<synchronous>, transform_indices = @transform_2, window_bounds = array<i64: 32, 1>}, {pipeline_mode = #tpu.pipeline_mode<synchronous>, transform_indices = @transform_3, window_bounds = array<i64: 32, 64>}, {pipeline_mode = #tpu.pipeline_mode<synchronous>, transform_indices = @transform_4, window_bounds = array<i64: 32, 64>}, {pipeline_mode = #tpu.pipeline_mode<synchronous>, transform_indices = @transform_5, window_bounds = array<i64: 32, 64>}, {pipeline_mode = #tpu.pipeline_mode<synchronous>, transform_indices = @transform_6, window_bounds = array<i64: 32, 96>}, {pipeline_mode = #tpu.pipeline_mode<synchronous>, transform_indices = @transform_7, window_bounds = array<i64: 32, 32>}, {pipeline_mode = #tpu.pipeline_mode<synchronous>, transform_indices = @transform_8, window_bounds = array<i64: 32, 32>}, {pipeline_mode = #tpu.pipeline_mode<synchronous>, transform_indices = @transform_9, window_bounds = array<i64: 32, 64>}, {pipeline_mode = #tpu.pipeline_mode<synchronous>, transform_indices = @transform_10, window_bounds = array<i64: 32, 64>}, {pipeline_mode = #tpu.pipeline_mode<synchronous>, transform_indices = @transform_11, window_bounds = array<i64: 32, 64>}, {pipeline_mode = #tpu.pipeline_mode<synchronous>, transform_indices = @transform_12, window_bounds = array<i64: 32, 96>}, {pipeline_mode = #tpu.pipeline_mode<synchronous>, transform_indices = @transform_13, window_bounds = array<i64: 32, 32>}, {pipeline_mode = #tpu.pipeline_mode<synchronous>, transform_indices = @transform_14, window_bounds = array<i64: 32, 32>}, {pipeline_mode = #tpu.pipeline_mode<synchronous>, transform_indices = @transform_15, window_bounds = array<i64: 32, 1>}, {pipeline_mode = #tpu.pipeline_mode<synchronous>, transform_indices = @transform_16, window_bounds = array<i64: 32, 1>}, {pipeline_mode = #tpu.pipeline_mode<synchronous>, transform_indices = @transform_17, window_bounds = array<i64: 32, 1>}, {pipeline_mode = #tpu.pipeline_mode<synchronous>, transform_indices = @transform_18, window_bounds = array<i64: 32, 1>}, {pipeline_mode = #tpu.pipeline_mode<synchronous>, transform_indices = @transform_19, window_bounds = array<i64: 32, 1>}, {pipeline_mode = #tpu.pipeline_mode<synchronous>, transform_indices = @transform_20, window_bounds = array<i64: 32, 1>}, {pipeline_mode = #tpu.pipeline_mode<synchronous>, transform_indices = @transform_21, window_bounds = array<i64: 32, 1>}, {pipeline_mode = #tpu.pipeline_mode<synchronous>, transform_indices = @transform_22, window_bounds = array<i64: 32, 1>}, {pipeline_mode = #tpu.pipeline_mode<synchronous>, transform_indices = @transform_23, window_bounds = array<i64: 32, 1>}, {pipeline_mode = #tpu.pipeline_mode<synchronous>, transform_indices = @transform_24, window_bounds = array<i64: 32, 1>}, {pipeline_mode = #tpu.pipeline_mode<synchronous>, transform_indices = @transform_25, window_bounds = array<i64: 32, 1>}, {pipeline_mode = #tpu.pipeline_mode<synchronous>, transform_indices = @transform_26, window_bounds = array<i64: 32, 1>}, {pipeline_mode = #tpu.pipeline_mode<synchronous>, transform_indices = @transform_27, window_bounds = array<i64: 32, 32>}, {pipeline_mode = #tpu.pipeline_mode<synchronous>, transform_indices = @transform_28, window_bounds = array<i64: 32, 1>}, {pipeline_mode = #tpu.pipeline_mode<synchronous>, transform_indices = @transform_29, window_bounds = array<i64: 32, 32>}, {pipeline_mode = #tpu.pipeline_mode<synchronous>, transform_indices = @transform_30, window_bounds = array<i64: 32, 1>}, {pipeline_mode = #tpu.pipeline_mode<synchronous>, transform_indices = @transform_31, window_bounds = array<i64: 32, 32>}, {pipeline_mode = #tpu.pipeline_mode<synchronous>, transform_indices = @transform_32, window_bounds = array<i64: 32, 1>}, {transform_indices = @transform_33, window_bounds = array<i64: 1, 32, 16>}]} {
    %c0_i32 = arith.constant 0 : i32
    %0 = arith.cmpi eq, %arg1, %c0_i32 : i32
    %1 = arith.extui %0 : i1 to i32
    %c0_i32_0 = arith.constant 0 : i32
    %2 = arith.cmpi ne, %1, %c0_i32_0 : i32
    scf.if %2 {
      %cst_119 = arith.constant 0.000000e+00 : f32
      %207 = vector.broadcast %cst_119 : f32 to vector<6x32x16xf32>
      %c0_120 = arith.constant 0 : index
      %c0_121 = arith.constant 0 : index
      %c0_122 = arith.constant 0 : index
      %208 = vector.load %arg36[%c0_120, %c0_121, %c0_122] : memref<6x32x16xf32, #tpu.memory_space<vmem>>, vector<6x32x16xf32>
      tpu.vector_store %arg36[%c0_120, %c0_121, %c0_122], %207 {strides = array<i32>} : memref<6x32x16xf32, #tpu.memory_space<vmem>>, vector<6x32x16xf32>,
    } else {
    }
    %c0 = arith.constant 0 : index
    %c0_1 = arith.constant 0 : index
    %c0_2 = arith.constant 0 : index
    %3 = vector.load %arg2[%c0, %c0_1, %c0_2] : memref<1x4x16xf32, #tpu.memory_space<vmem>>, vector<1x4x16xf32>
    %4 = vector.shape_cast %3 : vector<1x4x16xf32> to vector<4x16xf32>
    %c0_3 = arith.constant 0 : index
    %c0_4 = arith.constant 0 : index
    %5 = vector.load %arg3[%c0_3, %c0_4] : memref<32x4xf32, #tpu.memory_space<vmem>>, vector<32x4xf32>
    %6 = vector.extract_strided_slice %5 {offsets = [0, 0], sizes = [32, 1], strides = [1, 1]} : vector<32x4xf32> to vector<32x1xf32>
    %7 = vector.extract_strided_slice %4 {offsets = [0, 0], sizes = [1, 16], strides = [1, 1]} : vector<4x16xf32> to vector<1x16xf32>
    %8 = vector.broadcast %6 : vector<32x1xf32> to vector<32x16xf32>
    %9 = vector.broadcast %7 : vector<1x16xf32> to vector<32x16xf32>
    %10 = arith.mulf %8, %9 : vector<32x16xf32>
    %11 = vector.extract_strided_slice %5 {offsets = [0, 1], sizes = [32, 1], strides = [1, 1]} : vector<32x4xf32> to vector<32x1xf32>
    %12 = vector.extract_strided_slice %4 {offsets = [1, 0], sizes = [1, 16], strides = [1, 1]} : vector<4x16xf32> to vector<1x16xf32>
    %13 = vector.broadcast %11 : vector<32x1xf32> to vector<32x16xf32>
    %14 = vector.broadcast %12 : vector<1x16xf32> to vector<32x16xf32>
    %15 = arith.mulf %13, %14 : vector<32x16xf32>
    %16 = arith.addf %10, %15 : vector<32x16xf32>
    %17 = vector.extract_strided_slice %5 {offsets = [0, 2], sizes = [32, 1], strides = [1, 1]} : vector<32x4xf32> to vector<32x1xf32>
    %18 = vector.extract_strided_slice %4 {offsets = [2, 0], sizes = [1, 16], strides = [1, 1]} : vector<4x16xf32> to vector<1x16xf32>
    %19 = vector.broadcast %17 : vector<32x1xf32> to vector<32x16xf32>
    %20 = vector.broadcast %18 : vector<1x16xf32> to vector<32x16xf32>
    %21 = arith.mulf %19, %20 : vector<32x16xf32>
    %22 = arith.addf %16, %21 : vector<32x16xf32>
    %23 = vector.extract_strided_slice %5 {offsets = [0, 3], sizes = [32, 1], strides = [1, 1]} : vector<32x4xf32> to vector<32x1xf32>
    %24 = vector.extract_strided_slice %4 {offsets = [3, 0], sizes = [1, 16], strides = [1, 1]} : vector<4x16xf32> to vector<1x16xf32>
    %25 = vector.broadcast %23 : vector<32x1xf32> to vector<32x16xf32>
    %26 = vector.broadcast %24 : vector<1x16xf32> to vector<32x16xf32>
    %27 = arith.mulf %25, %26 : vector<32x16xf32>
    %28 = arith.addf %22, %27 : vector<32x16xf32>
    %c0_5 = arith.constant 0 : index
    %c0_6 = arith.constant 0 : index
    %29 = vector.load %arg4[%c0_5, %c0_6] : memref<32x1xf32, #tpu.memory_space<vmem>>, vector<32x1xf32>
    %30 = vector.broadcast %29 : vector<32x1xf32> to vector<32x16xf32>
    %31 = arith.addf %28, %30 : vector<32x16xf32>
    %c0_7 = arith.constant 0 : index
    %c0_8 = arith.constant 0 : index
    %c0_9 = arith.constant 0 : index
    %32 = vector.load %arg36[%c0_7, %c0_8, %c0_9] : memref<6x32x16xf32, #tpu.memory_space<vmem>>, vector<1x32x16xf32>
    %33 = vector.shape_cast %32 : vector<1x32x16xf32> to vector<32x16xf32>
    %34 = tpu.concatenate %33, %31 in 1 : vector<32x16xf32>, vector<32x16xf32> -> vector<32x32xf32>
    %c0_10 = arith.constant 0 : index
    %c0_11 = arith.constant 0 : index
    %c0_12 = arith.constant 0 : index
    %35 = vector.load %arg36[%c0_10, %c0_11, %c0_12] : memref<6x32x16xf32, #tpu.memory_space<vmem>>, vector<1x32x16xf32>
    %36 = vector.shape_cast %35 : vector<1x32x16xf32> to vector<32x16xf32>
    %37 = vector.shape_cast %31 : vector<32x16xf32> to vector<1x32x16xf32>
    tpu.vector_store %arg36[%c0_10, %c0_11, %c0_12], %37 {strides = array<i32>} : memref<6x32x16xf32, #tpu.memory_space<vmem>>, vector<1x32x16xf32>,
    %38 = vector.extract_strided_slice %34 {offsets = [0, 15], sizes = [32, 16], strides = [1, 1]} : vector<32x32xf32> to vector<32x16xf32>
    %39 = tpu.concatenate %38, %31 in 0 : vector<32x16xf32>, vector<32x16xf32> -> vector<64x16xf32>
    %c0_13 = arith.constant 0 : index
    %c0_14 = arith.constant 0 : index
    %40 = vector.load %arg5[%c0_13, %c0_14] : memref<32x64xf32, #tpu.memory_space<vmem>>, vector<32x64xf32>
    %cst = arith.constant dense<0.000000e+00> : vector<32x16xf32>
    %41 = tpu.matmul %40, %39, %cst {dimension_numbers = #tpu.dot_dimension_numbers<[1], [0], [0], [1], [0, 0, 1, 1], [], []>} : vector<32x64xf32>, vector<64x16xf32>, vector<32x16xf32> -> vector<32x16xf32>
    %c0_15 = arith.constant 0 : index
    %c0_16 = arith.constant 0 : index
    %42 = vector.load %arg17[%c0_15, %c0_16] : memref<32x1xf32, #tpu.memory_space<vmem>>, vector<32x1xf32>
    %43 = vector.broadcast %42 : vector<32x1xf32> to vector<32x16xf32>
    %44 = arith.addf %41, %43 : vector<32x16xf32>
    %c0_17 = arith.constant 0 : index
    %c0_18 = arith.constant 0 : index
    %45 = vector.load %arg11[%c0_17, %c0_18] : memref<32x64xf32, #tpu.memory_space<vmem>>, vector<32x64xf32>
    %cst_19 = arith.constant dense<0.000000e+00> : vector<32x16xf32>
    %46 = tpu.matmul %45, %39, %cst_19 {dimension_numbers = #tpu.dot_dimension_numbers<[1], [0], [0], [1], [0, 0, 1, 1], [], []>} : vector<32x64xf32>, vector<64x16xf32>, vector<32x16xf32> -> vector<32x16xf32>
    %c0_20 = arith.constant 0 : index
    %c0_21 = arith.constant 0 : index
    %47 = vector.load %arg23[%c0_20, %c0_21] : memref<32x1xf32, #tpu.memory_space<vmem>>, vector<32x1xf32>
    %48 = vector.broadcast %47 : vector<32x1xf32> to vector<32x16xf32>
    %49 = arith.addf %46, %48 : vector<32x16xf32>
    %50 = arith.negf %44 : vector<32x16xf32>
    %51 = math.exp %50 : vector<32x16xf32>
    %cst_22 = arith.constant 1.000000e+00 : f32
    %52 = vector.broadcast %cst_22 : f32 to vector<32x16xf32>
    %53 = arith.addf %52, %51 : vector<32x16xf32>
    %54 = arith.divf %52, %53 : vector<32x16xf32>
    %55 = arith.mulf %54, %49 : vector<32x16xf32>
    %cst_23 = arith.constant 1.000000e+00 : f32
    %56 = vector.broadcast %cst_23 : f32 to vector<32x16xf32>
    %57 = arith.subf %56, %54 : vector<32x16xf32>
    %58 = arith.mulf %57, %31 : vector<32x16xf32>
    %59 = arith.addf %55, %58 : vector<32x16xf32>
    %c1 = arith.constant 1 : index
    %c0_24 = arith.constant 0 : index
    %c0_25 = arith.constant 0 : index
    %60 = vector.load %arg36[%c1, %c0_24, %c0_25] : memref<6x32x16xf32, #tpu.memory_space<vmem>>, vector<1x32x16xf32>
    %61 = vector.shape_cast %60 : vector<1x32x16xf32> to vector<32x16xf32>
    %62 = tpu.concatenate %61, %59 in 1 : vector<32x16xf32>, vector<32x16xf32> -> vector<32x32xf32>
    %c1_26 = arith.constant 1 : index
    %c0_27 = arith.constant 0 : index
    %c0_28 = arith.constant 0 : index
    %63 = vector.load %arg36[%c1_26, %c0_27, %c0_28] : memref<6x32x16xf32, #tpu.memory_space<vmem>>, vector<1x32x16xf32>
    %64 = vector.shape_cast %63 : vector<1x32x16xf32> to vector<32x16xf32>
    %65 = vector.shape_cast %59 : vector<32x16xf32> to vector<1x32x16xf32>
    tpu.vector_store %arg36[%c1_26, %c0_27, %c0_28], %65 {strides = array<i32>} : memref<6x32x16xf32, #tpu.memory_space<vmem>>, vector<1x32x16xf32>,
    %66 = vector.extract_strided_slice %62 {offsets = [0, 14], sizes = [32, 16], strides = [1, 1]} : vector<32x32xf32> to vector<32x16xf32>
    %67 = tpu.concatenate %66, %59 in 0 : vector<32x16xf32>, vector<32x16xf32> -> vector<64x16xf32>
    %c0_29 = arith.constant 0 : index
    %c0_30 = arith.constant 0 : index
    %68 = vector.load %arg6[%c0_29, %c0_30] : memref<32x64xf32, #tpu.memory_space<vmem>>, vector<32x64xf32>
    %cst_31 = arith.constant dense<0.000000e+00> : vector<32x16xf32>
    %69 = tpu.matmul %68, %67, %cst_31 {dimension_numbers = #tpu.dot_dimension_numbers<[1], [0], [0], [1], [0, 0, 1, 1], [], []>} : vector<32x64xf32>, vector<64x16xf32>, vector<32x16xf32> -> vector<32x16xf32>
    %c0_32 = arith.constant 0 : index
    %c0_33 = arith.constant 0 : index
    %70 = vector.load %arg18[%c0_32, %c0_33] : memref<32x1xf32, #tpu.memory_space<vmem>>, vector<32x1xf32>
    %71 = vector.broadcast %70 : vector<32x1xf32> to vector<32x16xf32>
    %72 = arith.addf %69, %71 : vector<32x16xf32>
    %c0_34 = arith.constant 0 : index
    %c0_35 = arith.constant 0 : index
    %73 = vector.load %arg12[%c0_34, %c0_35] : memref<32x64xf32, #tpu.memory_space<vmem>>, vector<32x64xf32>
    %cst_36 = arith.constant dense<0.000000e+00> : vector<32x16xf32>
    %74 = tpu.matmul %73, %67, %cst_36 {dimension_numbers = #tpu.dot_dimension_numbers<[1], [0], [0], [1], [0, 0, 1, 1], [], []>} : vector<32x64xf32>, vector<64x16xf32>, vector<32x16xf32> -> vector<32x16xf32>
    %c0_37 = arith.constant 0 : index
    %c0_38 = arith.constant 0 : index
    %75 = vector.load %arg24[%c0_37, %c0_38] : memref<32x1xf32, #tpu.memory_space<vmem>>, vector<32x1xf32>
    %76 = vector.broadcast %75 : vector<32x1xf32> to vector<32x16xf32>
    %77 = arith.addf %74, %76 : vector<32x16xf32>
    %78 = arith.negf %72 : vector<32x16xf32>
    %79 = math.exp %78 : vector<32x16xf32>
    %cst_39 = arith.constant 1.000000e+00 : f32
    %80 = vector.broadcast %cst_39 : f32 to vector<32x16xf32>
    %81 = arith.addf %80, %79 : vector<32x16xf32>
    %82 = arith.divf %80, %81 : vector<32x16xf32>
    %83 = arith.mulf %82, %77 : vector<32x16xf32>
    %cst_40 = arith.constant 1.000000e+00 : f32
    %84 = vector.broadcast %cst_40 : f32 to vector<32x16xf32>
    %85 = arith.subf %84, %82 : vector<32x16xf32>
    %86 = arith.mulf %85, %59 : vector<32x16xf32>
    %87 = arith.addf %83, %86 : vector<32x16xf32>
    %c2 = arith.constant 2 : index
    %c0_41 = arith.constant 0 : index
    %c0_42 = arith.constant 0 : index
    %88 = vector.load %arg36[%c2, %c0_41, %c0_42] : memref<6x32x16xf32, #tpu.memory_space<vmem>>, vector<1x32x16xf32>
    %89 = vector.shape_cast %88 : vector<1x32x16xf32> to vector<32x16xf32>
    %90 = tpu.concatenate %89, %87 in 1 : vector<32x16xf32>, vector<32x16xf32> -> vector<32x32xf32>
    %c2_43 = arith.constant 2 : index
    %c0_44 = arith.constant 0 : index
    %c0_45 = arith.constant 0 : index
    %91 = vector.load %arg36[%c2_43, %c0_44, %c0_45] : memref<6x32x16xf32, #tpu.memory_space<vmem>>, vector<1x32x16xf32>
    %92 = vector.shape_cast %91 : vector<1x32x16xf32> to vector<32x16xf32>
    %93 = vector.shape_cast %87 : vector<32x16xf32> to vector<1x32x16xf32>
    tpu.vector_store %arg36[%c2_43, %c0_44, %c0_45], %93 {strides = array<i32>} : memref<6x32x16xf32, #tpu.memory_space<vmem>>, vector<1x32x16xf32>,
    %94 = vector.extract_strided_slice %90 {offsets = [0, 12], sizes = [32, 16], strides = [1, 1]} : vector<32x32xf32> to vector<32x16xf32>
    %95 = tpu.concatenate %94, %87 in 0 : vector<32x16xf32>, vector<32x16xf32> -> vector<64x16xf32>
    %c0_46 = arith.constant 0 : index
    %c0_47 = arith.constant 0 : index
    %96 = vector.load %arg7[%c0_46, %c0_47] : memref<32x64xf32, #tpu.memory_space<vmem>>, vector<32x64xf32>
    %cst_48 = arith.constant dense<0.000000e+00> : vector<32x16xf32>
    %97 = tpu.matmul %96, %95, %cst_48 {dimension_numbers = #tpu.dot_dimension_numbers<[1], [0], [0], [1], [0, 0, 1, 1], [], []>} : vector<32x64xf32>, vector<64x16xf32>, vector<32x16xf32> -> vector<32x16xf32>
    %c0_49 = arith.constant 0 : index
    %c0_50 = arith.constant 0 : index
    %98 = vector.load %arg19[%c0_49, %c0_50] : memref<32x1xf32, #tpu.memory_space<vmem>>, vector<32x1xf32>
    %99 = vector.broadcast %98 : vector<32x1xf32> to vector<32x16xf32>
    %100 = arith.addf %97, %99 : vector<32x16xf32>
    %c0_51 = arith.constant 0 : index
    %c0_52 = arith.constant 0 : index
    %101 = vector.load %arg13[%c0_51, %c0_52] : memref<32x64xf32, #tpu.memory_space<vmem>>, vector<32x64xf32>
    %cst_53 = arith.constant dense<0.000000e+00> : vector<32x16xf32>
    %102 = tpu.matmul %101, %95, %cst_53 {dimension_numbers = #tpu.dot_dimension_numbers<[1], [0], [0], [1], [0, 0, 1, 1], [], []>} : vector<32x64xf32>, vector<64x16xf32>, vector<32x16xf32> -> vector<32x16xf32>
    %c0_54 = arith.constant 0 : index
    %c0_55 = arith.constant 0 : index
    %103 = vector.load %arg25[%c0_54, %c0_55] : memref<32x1xf32, #tpu.memory_space<vmem>>, vector<32x1xf32>
    %104 = vector.broadcast %103 : vector<32x1xf32> to vector<32x16xf32>
    %105 = arith.addf %102, %104 : vector<32x16xf32>
    %106 = arith.negf %100 : vector<32x16xf32>
    %107 = math.exp %106 : vector<32x16xf32>
    %cst_56 = arith.constant 1.000000e+00 : f32
    %108 = vector.broadcast %cst_56 : f32 to vector<32x16xf32>
    %109 = arith.addf %108, %107 : vector<32x16xf32>
    %110 = arith.divf %108, %109 : vector<32x16xf32>
    %111 = arith.mulf %110, %105 : vector<32x16xf32>
    %cst_57 = arith.constant 1.000000e+00 : f32
    %112 = vector.broadcast %cst_57 : f32 to vector<32x16xf32>
    %113 = arith.subf %112, %110 : vector<32x16xf32>
    %114 = arith.mulf %113, %87 : vector<32x16xf32>
    %115 = arith.addf %111, %114 : vector<32x16xf32>
    %c3 = arith.constant 3 : index
    %c0_58 = arith.constant 0 : index
    %c0_59 = arith.constant 0 : index
    %116 = vector.load %arg36[%c3, %c0_58, %c0_59] : memref<6x32x16xf32, #tpu.memory_space<vmem>>, vector<1x32x16xf32>
    %117 = vector.shape_cast %116 : vector<1x32x16xf32> to vector<32x16xf32>
    %118 = tpu.concatenate %117, %115 in 1 : vector<32x16xf32>, vector<32x16xf32> -> vector<32x32xf32>
    %c3_60 = arith.constant 3 : index
    %c0_61 = arith.constant 0 : index
    %c0_62 = arith.constant 0 : index
    %119 = vector.load %arg36[%c3_60, %c0_61, %c0_62] : memref<6x32x16xf32, #tpu.memory_space<vmem>>, vector<1x32x16xf32>
    %120 = vector.shape_cast %119 : vector<1x32x16xf32> to vector<32x16xf32>
    %121 = vector.shape_cast %115 : vector<32x16xf32> to vector<1x32x16xf32>
    tpu.vector_store %arg36[%c3_60, %c0_61, %c0_62], %121 {strides = array<i32>} : memref<6x32x16xf32, #tpu.memory_space<vmem>>, vector<1x32x16xf32>,
    %122 = vector.extract_strided_slice %118 {offsets = [0, 0], sizes = [32, 16], strides = [1, 1]} : vector<32x32xf32> to vector<32x16xf32>
    %123 = vector.extract_strided_slice %118 {offsets = [0, 8], sizes = [32, 16], strides = [1, 1]} : vector<32x32xf32> to vector<32x16xf32>
    %124 = tpu.concatenate %122, %123, %115 in 0 : vector<32x16xf32>, vector<32x16xf32>, vector<32x16xf32> -> vector<96x16xf32>
    %c0_63 = arith.constant 0 : index
    %c0_64 = arith.constant 0 : index
    %125 = vector.load %arg8[%c0_63, %c0_64] : memref<32x96xf32, #tpu.memory_space<vmem>>, vector<32x96xf32>
    %cst_65 = arith.constant dense<0.000000e+00> : vector<32x16xf32>
    %126 = tpu.matmul %125, %124, %cst_65 {dimension_numbers = #tpu.dot_dimension_numbers<[1], [0], [0], [1], [0, 0, 1, 1], [], []>} : vector<32x96xf32>, vector<96x16xf32>, vector<32x16xf32> -> vector<32x16xf32>
    %c0_66 = arith.constant 0 : index
    %c0_67 = arith.constant 0 : index
    %127 = vector.load %arg20[%c0_66, %c0_67] : memref<32x1xf32, #tpu.memory_space<vmem>>, vector<32x1xf32>
    %128 = vector.broadcast %127 : vector<32x1xf32> to vector<32x16xf32>
    %129 = arith.addf %126, %128 : vector<32x16xf32>
    %c0_68 = arith.constant 0 : index
    %c0_69 = arith.constant 0 : index
    %130 = vector.load %arg14[%c0_68, %c0_69] : memref<32x96xf32, #tpu.memory_space<vmem>>, vector<32x96xf32>
    %cst_70 = arith.constant dense<0.000000e+00> : vector<32x16xf32>
    %131 = tpu.matmul %130, %124, %cst_70 {dimension_numbers = #tpu.dot_dimension_numbers<[1], [0], [0], [1], [0, 0, 1, 1], [], []>} : vector<32x96xf32>, vector<96x16xf32>, vector<32x16xf32> -> vector<32x16xf32>
    %c0_71 = arith.constant 0 : index
    %c0_72 = arith.constant 0 : index
    %132 = vector.load %arg26[%c0_71, %c0_72] : memref<32x1xf32, #tpu.memory_space<vmem>>, vector<32x1xf32>
    %133 = vector.broadcast %132 : vector<32x1xf32> to vector<32x16xf32>
    %134 = arith.addf %131, %133 : vector<32x16xf32>
    %135 = arith.negf %129 : vector<32x16xf32>
    %136 = math.exp %135 : vector<32x16xf32>
    %cst_73 = arith.constant 1.000000e+00 : f32
    %137 = vector.broadcast %cst_73 : f32 to vector<32x16xf32>
    %138 = arith.addf %137, %136 : vector<32x16xf32>
    %139 = arith.divf %137, %138 : vector<32x16xf32>
    %140 = arith.mulf %139, %134 : vector<32x16xf32>
    %cst_74 = arith.constant 1.000000e+00 : f32
    %141 = vector.broadcast %cst_74 : f32 to vector<32x16xf32>
    %142 = arith.subf %141, %139 : vector<32x16xf32>
    %143 = arith.mulf %142, %115 : vector<32x16xf32>
    %144 = arith.addf %140, %143 : vector<32x16xf32>
    %c0_75 = arith.constant 0 : index
    %c0_76 = arith.constant 0 : index
    %145 = vector.load %arg9[%c0_75, %c0_76] : memref<32x32xf32, #tpu.memory_space<vmem>>, vector<32x32xf32>
    %cst_77 = arith.constant dense<0.000000e+00> : vector<32x16xf32>
    %146 = tpu.matmul %145, %144, %cst_77 {dimension_numbers = #tpu.dot_dimension_numbers<[1], [0], [0], [1], [0, 0, 1, 1], [], []>} : vector<32x32xf32>, vector<32x16xf32>, vector<32x16xf32> -> vector<32x16xf32>
    %c0_78 = arith.constant 0 : index
    %c0_79 = arith.constant 0 : index
    %147 = vector.load %arg21[%c0_78, %c0_79] : memref<32x1xf32, #tpu.memory_space<vmem>>, vector<32x1xf32>
    %148 = vector.broadcast %147 : vector<32x1xf32> to vector<32x16xf32>
    %149 = arith.addf %146, %148 : vector<32x16xf32>
    %c0_80 = arith.constant 0 : index
    %c0_81 = arith.constant 0 : index
    %150 = vector.load %arg15[%c0_80, %c0_81] : memref<32x32xf32, #tpu.memory_space<vmem>>, vector<32x32xf32>
    %cst_82 = arith.constant dense<0.000000e+00> : vector<32x16xf32>
    %151 = tpu.matmul %150, %144, %cst_82 {dimension_numbers = #tpu.dot_dimension_numbers<[1], [0], [0], [1], [0, 0, 1, 1], [], []>} : vector<32x32xf32>, vector<32x16xf32>, vector<32x16xf32> -> vector<32x16xf32>
    %c0_83 = arith.constant 0 : index
    %c0_84 = arith.constant 0 : index
    %152 = vector.load %arg27[%c0_83, %c0_84] : memref<32x1xf32, #tpu.memory_space<vmem>>, vector<32x1xf32>
    %153 = vector.broadcast %152 : vector<32x1xf32> to vector<32x16xf32>
    %154 = arith.addf %151, %153 : vector<32x16xf32>
    %155 = arith.negf %149 : vector<32x16xf32>
    %156 = math.exp %155 : vector<32x16xf32>
    %cst_85 = arith.constant 1.000000e+00 : f32
    %157 = vector.broadcast %cst_85 : f32 to vector<32x16xf32>
    %158 = arith.addf %157, %156 : vector<32x16xf32>
    %159 = arith.divf %157, %158 : vector<32x16xf32>
    %160 = arith.mulf %159, %154 : vector<32x16xf32>
    %cst_86 = arith.constant 1.000000e+00 : f32
    %161 = vector.broadcast %cst_86 : f32 to vector<32x16xf32>
    %162 = arith.subf %161, %159 : vector<32x16xf32>
    %163 = arith.mulf %162, %144 : vector<32x16xf32>
    %164 = arith.addf %160, %163 : vector<32x16xf32>
    %c0_87 = arith.constant 0 : index
    %c0_88 = arith.constant 0 : index
    %165 = vector.load %arg10[%c0_87, %c0_88] : memref<32x32xf32, #tpu.memory_space<vmem>>, vector<32x32xf32>
    %cst_89 = arith.constant dense<0.000000e+00> : vector<32x16xf32>
    %166 = tpu.matmul %165, %164, %cst_89 {dimension_numbers = #tpu.dot_dimension_numbers<[1], [0], [0], [1], [0, 0, 1, 1], [], []>} : vector<32x32xf32>, vector<32x16xf32>, vector<32x16xf32> -> vector<32x16xf32>
    %c0_90 = arith.constant 0 : index
    %c0_91 = arith.constant 0 : index
    %167 = vector.load %arg22[%c0_90, %c0_91] : memref<32x1xf32, #tpu.memory_space<vmem>>, vector<32x1xf32>
    %168 = vector.broadcast %167 : vector<32x1xf32> to vector<32x16xf32>
    %169 = arith.addf %166, %168 : vector<32x16xf32>
    %c0_92 = arith.constant 0 : index
    %c0_93 = arith.constant 0 : index
    %170 = vector.load %arg16[%c0_92, %c0_93] : memref<32x32xf32, #tpu.memory_space<vmem>>, vector<32x32xf32>
    %cst_94 = arith.constant dense<0.000000e+00> : vector<32x16xf32>
    %171 = tpu.matmul %170, %164, %cst_94 {dimension_numbers = #tpu.dot_dimension_numbers<[1], [0], [0], [1], [0, 0, 1, 1], [], []>} : vector<32x32xf32>, vector<32x16xf32>, vector<32x16xf32> -> vector<32x16xf32>
    %c0_95 = arith.constant 0 : index
    %c0_96 = arith.constant 0 : index
    %172 = vector.load %arg28[%c0_95, %c0_96] : memref<32x1xf32, #tpu.memory_space<vmem>>, vector<32x1xf32>
    %173 = vector.broadcast %172 : vector<32x1xf32> to vector<32x16xf32>
    %174 = arith.addf %171, %173 : vector<32x16xf32>
    %175 = arith.negf %169 : vector<32x16xf32>
    %176 = math.exp %175 : vector<32x16xf32>
    %cst_97 = arith.constant 1.000000e+00 : f32
    %177 = vector.broadcast %cst_97 : f32 to vector<32x16xf32>
    %178 = arith.addf %177, %176 : vector<32x16xf32>
    %179 = arith.divf %177, %178 : vector<32x16xf32>
    %180 = arith.mulf %179, %174 : vector<32x16xf32>
    %cst_98 = arith.constant 1.000000e+00 : f32
    %181 = vector.broadcast %cst_98 : f32 to vector<32x16xf32>
    %182 = arith.subf %181, %179 : vector<32x16xf32>
    %183 = arith.mulf %182, %164 : vector<32x16xf32>
    %184 = arith.addf %180, %183 : vector<32x16xf32>
    %c0_99 = arith.constant 0 : index
    %c0_100 = arith.constant 0 : index
    %185 = vector.load %arg29[%c0_99, %c0_100] : memref<32x32xf32, #tpu.memory_space<vmem>>, vector<32x32xf32>
    %cst_101 = arith.constant dense<0.000000e+00> : vector<32x16xf32>
    %186 = tpu.matmul %185, %184, %cst_101 {dimension_numbers = #tpu.dot_dimension_numbers<[1], [0], [0], [1], [0, 0, 1, 1], [], []>} : vector<32x32xf32>, vector<32x16xf32>, vector<32x16xf32> -> vector<32x16xf32>
    %c0_102 = arith.constant 0 : index
    %c0_103 = arith.constant 0 : index
    %187 = vector.load %arg30[%c0_102, %c0_103] : memref<32x1xf32, #tpu.memory_space<vmem>>, vector<32x1xf32>
    %188 = vector.broadcast %187 : vector<32x1xf32> to vector<32x16xf32>
    %189 = arith.addf %186, %188 : vector<32x16xf32>
    %cst_104 = arith.constant 0.000000e+00 : f32
    %190 = vector.broadcast %cst_104 : f32 to vector<32x16xf32>
    %191 = arith.maximumf %189, %190 : vector<32x16xf32>
    %c0_105 = arith.constant 0 : index
    %c0_106 = arith.constant 0 : index
    %192 = vector.load %arg31[%c0_105, %c0_106] : memref<32x32xf32, #tpu.memory_space<vmem>>, vector<32x32xf32>
    %cst_107 = arith.constant dense<0.000000e+00> : vector<32x16xf32>
    %193 = tpu.matmul %192, %191, %cst_107 {dimension_numbers = #tpu.dot_dimension_numbers<[1], [0], [0], [1], [0, 0, 1, 1], [], []>} : vector<32x32xf32>, vector<32x16xf32>, vector<32x16xf32> -> vector<32x16xf32>
    %c0_108 = arith.constant 0 : index
    %c0_109 = arith.constant 0 : index
    %194 = vector.load %arg32[%c0_108, %c0_109] : memref<32x1xf32, #tpu.memory_space<vmem>>, vector<32x1xf32>
    %195 = vector.broadcast %194 : vector<32x1xf32> to vector<32x16xf32>
    %196 = arith.addf %193, %195 : vector<32x16xf32>
    %cst_110 = arith.constant 0.000000e+00 : f32
    %197 = vector.broadcast %cst_110 : f32 to vector<32x16xf32>
    %198 = arith.maximumf %196, %197 : vector<32x16xf32>
    %c0_111 = arith.constant 0 : index
    %c0_112 = arith.constant 0 : index
    %199 = vector.load %arg33[%c0_111, %c0_112] : memref<32x32xf32, #tpu.memory_space<vmem>>, vector<32x32xf32>
    %cst_113 = arith.constant dense<0.000000e+00> : vector<32x16xf32>
    %200 = tpu.matmul %199, %198, %cst_113 {dimension_numbers = #tpu.dot_dimension_numbers<[1], [0], [0], [1], [0, 0, 1, 1], [], []>} : vector<32x32xf32>, vector<32x16xf32>, vector<32x16xf32> -> vector<32x16xf32>
    %c0_114 = arith.constant 0 : index
    %c0_115 = arith.constant 0 : index
    %201 = vector.load %arg34[%c0_114, %c0_115] : memref<32x1xf32, #tpu.memory_space<vmem>>, vector<32x1xf32>
    %202 = vector.broadcast %201 : vector<32x1xf32> to vector<32x16xf32>
    %203 = arith.addf %200, %202 : vector<32x16xf32>
    %c0_116 = arith.constant 0 : index
    %c0_117 = arith.constant 0 : index
    %c0_118 = arith.constant 0 : index
    %204 = vector.load %arg35[%c0_116, %c0_117, %c0_118] : memref<1x32x16xf32, #tpu.memory_space<vmem>>, vector<1x32x16xf32>
    %205 = vector.shape_cast %204 : vector<1x32x16xf32> to vector<32x16xf32>
    %206 = vector.shape_cast %203 : vector<32x16xf32> to vector<1x32x16xf32>
    tpu.vector_store %arg35[%c0_116, %c0_117, %c0_118], %206 {strides = array<i32>} : memref<1x32x16xf32, #tpu.memory_space<vmem>>, vector<1x32x16xf32>,
    return
  }
  func.func @transform_0(%arg0: i32, %arg1: i32) -> (i32, i32, i32) {
    %c0_i32 = arith.constant 0 : i32
    %c0_i32_0 = arith.constant 0 : i32
    return %arg0, %c0_i32, %arg1 : i32, i32, i32
  }
  func.func @transform_1(%arg0: i32, %arg1: i32) -> (i32, i32) {
    %c0_i32 = arith.constant 0 : i32
    %c0_i32_0 = arith.constant 0 : i32
    %c0_i32_1 = arith.constant 0 : i32
    return %c0_i32, %c0_i32_0 : i32, i32
  }
  func.func @transform_2(%arg0: i32, %arg1: i32) -> (i32, i32) {
    %c0_i32 = arith.constant 0 : i32
    %c0_i32_0 = arith.constant 0 : i32
    %c0_i32_1 = arith.constant 0 : i32
    return %c0_i32, %c0_i32_0 : i32, i32
  }
  func.func @transform_3(%arg0: i32, %arg1: i32) -> (i32, i32) {
    %c0_i32 = arith.constant 0 : i32
    %c0_i32_0 = arith.constant 0 : i32
    %c0_i32_1 = arith.constant 0 : i32
    return %c0_i32, %c0_i32_0 : i32, i32
  }
  func.func @transform_4(%arg0: i32, %arg1: i32) -> (i32, i32) {
    %c0_i32 = arith.constant 0 : i32
    %c0_i32_0 = arith.constant 0 : i32
    %c0_i32_1 = arith.constant 0 : i32
    return %c0_i32, %c0_i32_0 : i32, i32
  }
  func.func @transform_5(%arg0: i32, %arg1: i32) -> (i32, i32) {
    %c0_i32 = arith.constant 0 : i32
    %c0_i32_0 = arith.constant 0 : i32
    %c0_i32_1 = arith.constant 0 : i32
    return %c0_i32, %c0_i32_0 : i32, i32
  }
  func.func @transform_6(%arg0: i32, %arg1: i32) -> (i32, i32) {
    %c0_i32 = arith.constant 0 : i32
    %c0_i32_0 = arith.constant 0 : i32
    %c0_i32_1 = arith.constant 0 : i32
    return %c0_i32, %c0_i32_0 : i32, i32
  }
  func.func @transform_7(%arg0: i32, %arg1: i32) -> (i32, i32) {
    %c0_i32 = arith.constant 0 : i32
    %c0_i32_0 = arith.constant 0 : i32
    %c0_i32_1 = arith.constant 0 : i32
    return %c0_i32, %c0_i32_0 : i32, i32
  }
  func.func @transform_8(%arg0: i32, %arg1: i32) -> (i32, i32) {
    %c0_i32 = arith.constant 0 : i32
    %c0_i32_0 = arith.constant 0 : i32
    %c0_i32_1 = arith.constant 0 : i32
    return %c0_i32, %c0_i32_0 : i32, i32
  }
  func.func @transform_9(%arg0: i32, %arg1: i32) -> (i32, i32) {
    %c0_i32 = arith.constant 0 : i32
    %c0_i32_0 = arith.constant 0 : i32
    %c0_i32_1 = arith.constant 0 : i32
    return %c0_i32, %c0_i32_0 : i32, i32
  }
  func.func @transform_10(%arg0: i32, %arg1: i32) -> (i32, i32) {
    %c0_i32 = arith.constant 0 : i32
    %c0_i32_0 = arith.constant 0 : i32
    %c0_i32_1 = arith.constant 0 : i32
    return %c0_i32, %c0_i32_0 : i32, i32
  }
  func.func @transform_11(%arg0: i32, %arg1: i32) -> (i32, i32) {
    %c0_i32 = arith.constant 0 : i32
    %c0_i32_0 = arith.constant 0 : i32
    %c0_i32_1 = arith.constant 0 : i32
    return %c0_i32, %c0_i32_0 : i32, i32
  }
  func.func @transform_12(%arg0: i32, %arg1: i32) -> (i32, i32) {
    %c0_i32 = arith.constant 0 : i32
    %c0_i32_0 = arith.constant 0 : i32
    %c0_i32_1 = arith.constant 0 : i32
    return %c0_i32, %c0_i32_0 : i32, i32
  }
  func.func @transform_13(%arg0: i32, %arg1: i32) -> (i32, i32) {
    %c0_i32 = arith.constant 0 : i32
    %c0_i32_0 = arith.constant 0 : i32
    %c0_i32_1 = arith.constant 0 : i32
    return %c0_i32, %c0_i32_0 : i32, i32
  }
  func.func @transform_14(%arg0: i32, %arg1: i32) -> (i32, i32) {
    %c0_i32 = arith.constant 0 : i32
    %c0_i32_0 = arith.constant 0 : i32
    %c0_i32_1 = arith.constant 0 : i32
    return %c0_i32, %c0_i32_0 : i32, i32
  }
  func.func @transform_15(%arg0: i32, %arg1: i32) -> (i32, i32) {
    %c0_i32 = arith.constant 0 : i32
    %c0_i32_0 = arith.constant 0 : i32
    %c0_i32_1 = arith.constant 0 : i32
    return %c0_i32, %c0_i32_0 : i32, i32
  }
  func.func @transform_16(%arg0: i32, %arg1: i32) -> (i32, i32) {
    %c0_i32 = arith.constant 0 : i32
    %c0_i32_0 = arith.constant 0 : i32
    %c0_i32_1 = arith.constant 0 : i32
    return %c0_i32, %c0_i32_0 : i32, i32
  }
  func.func @transform_17(%arg0: i32, %arg1: i32) -> (i32, i32) {
    %c0_i32 = arith.constant 0 : i32
    %c0_i32_0 = arith.constant 0 : i32
    %c0_i32_1 = arith.constant 0 : i32
    return %c0_i32, %c0_i32_0 : i32, i32
  }
  func.func @transform_18(%arg0: i32, %arg1: i32) -> (i32, i32) {
    %c0_i32 = arith.constant 0 : i32
    %c0_i32_0 = arith.constant 0 : i32
    %c0_i32_1 = arith.constant 0 : i32
    return %c0_i32, %c0_i32_0 : i32, i32
  }
  func.func @transform_19(%arg0: i32, %arg1: i32) -> (i32, i32) {
    %c0_i32 = arith.constant 0 : i32
    %c0_i32_0 = arith.constant 0 : i32
    %c0_i32_1 = arith.constant 0 : i32
    return %c0_i32, %c0_i32_0 : i32, i32
  }
  func.func @transform_20(%arg0: i32, %arg1: i32) -> (i32, i32) {
    %c0_i32 = arith.constant 0 : i32
    %c0_i32_0 = arith.constant 0 : i32
    %c0_i32_1 = arith.constant 0 : i32
    return %c0_i32, %c0_i32_0 : i32, i32
  }
  func.func @transform_21(%arg0: i32, %arg1: i32) -> (i32, i32) {
    %c0_i32 = arith.constant 0 : i32
    %c0_i32_0 = arith.constant 0 : i32
    %c0_i32_1 = arith.constant 0 : i32
    return %c0_i32, %c0_i32_0 : i32, i32
  }
  func.func @transform_22(%arg0: i32, %arg1: i32) -> (i32, i32) {
    %c0_i32 = arith.constant 0 : i32
    %c0_i32_0 = arith.constant 0 : i32
    %c0_i32_1 = arith.constant 0 : i32
    return %c0_i32, %c0_i32_0 : i32, i32
  }
  func.func @transform_23(%arg0: i32, %arg1: i32) -> (i32, i32) {
    %c0_i32 = arith.constant 0 : i32
    %c0_i32_0 = arith.constant 0 : i32
    %c0_i32_1 = arith.constant 0 : i32
    return %c0_i32, %c0_i32_0 : i32, i32
  }
  func.func @transform_24(%arg0: i32, %arg1: i32) -> (i32, i32) {
    %c0_i32 = arith.constant 0 : i32
    %c0_i32_0 = arith.constant 0 : i32
    %c0_i32_1 = arith.constant 0 : i32
    return %c0_i32, %c0_i32_0 : i32, i32
  }
  func.func @transform_25(%arg0: i32, %arg1: i32) -> (i32, i32) {
    %c0_i32 = arith.constant 0 : i32
    %c0_i32_0 = arith.constant 0 : i32
    %c0_i32_1 = arith.constant 0 : i32
    return %c0_i32, %c0_i32_0 : i32, i32
  }
  func.func @transform_26(%arg0: i32, %arg1: i32) -> (i32, i32) {
    %c0_i32 = arith.constant 0 : i32
    %c0_i32_0 = arith.constant 0 : i32
    %c0_i32_1 = arith.constant 0 : i32
    return %c0_i32, %c0_i32_0 : i32, i32
  }
  func.func @transform_27(%arg0: i32, %arg1: i32) -> (i32, i32) {
    %c0_i32 = arith.constant 0 : i32
    %c0_i32_0 = arith.constant 0 : i32
    %c0_i32_1 = arith.constant 0 : i32
    return %c0_i32, %c0_i32_0 : i32, i32
  }
  func.func @transform_28(%arg0: i32, %arg1: i32) -> (i32, i32) {
    %c0_i32 = arith.constant 0 : i32
    %c0_i32_0 = arith.constant 0 : i32
    %c0_i32_1 = arith.constant 0 : i32
    return %c0_i32, %c0_i32_0 : i32, i32
  }
  func.func @transform_29(%arg0: i32, %arg1: i32) -> (i32, i32) {
    %c0_i32 = arith.constant 0 : i32
    %c0_i32_0 = arith.constant 0 : i32
    %c0_i32_1 = arith.constant 0 : i32
    return %c0_i32, %c0_i32_0 : i32, i32
  }
  func.func @transform_30(%arg0: i32, %arg1: i32) -> (i32, i32) {
    %c0_i32 = arith.constant 0 : i32
    %c0_i32_0 = arith.constant 0 : i32
    %c0_i32_1 = arith.constant 0 : i32
    return %c0_i32, %c0_i32_0 : i32, i32
  }
  func.func @transform_31(%arg0: i32, %arg1: i32) -> (i32, i32) {
    %c0_i32 = arith.constant 0 : i32
    %c0_i32_0 = arith.constant 0 : i32
    %c0_i32_1 = arith.constant 0 : i32
    return %c0_i32, %c0_i32_0 : i32, i32
  }
  func.func @transform_32(%arg0: i32, %arg1: i32) -> (i32, i32) {
    %c0_i32 = arith.constant 0 : i32
    %c0_i32_0 = arith.constant 0 : i32
    %c0_i32_1 = arith.constant 0 : i32
    return %c0_i32, %c0_i32_0 : i32, i32
  }
  func.func @transform_33(%arg0: i32, %arg1: i32) -> (i32, i32, i32) {
    %c0_i32 = arith.constant 0 : i32
    %c0_i32_0 = arith.constant 0 : i32
    return %arg0, %c0_i32, %arg1 : i32, i32, i32
  }
}

</mosaic_0001>

<bundles_post_ra>
// kernel: tpu_custom_call.1
= control target key start
LH: loop header
LB: loop body
LE: loop exit
PB: predicated region body
PF: predicated region fallthrough
CT: control target
= control target key end

     0   :  { %s4460_s6 = smov 1   ;;  %s4461_s10 = smov 2   ;;  %s5173_s0 = inlined_call_operand.smem [shape: u32[34], index: -1, kind: input, shape index: {}] }
   0x1   :  { %s4514_s5 = sld [smem:[%s5173_s0]]   ;;  %s4462_s14 = smov 3  }
   0x2   :  { %s4519_s9 = sld [smem:[%s5173_s0 + %s4460_s6]]   ;;  %s4463_s18 = smov 4  }
   0x3   :  { %s4524_s13 = sld [smem:[%s5173_s0 + %s4461_s10]]   ;;  %s4464_s22 = smov 5  }
   0x4   :  { %s4529_s17 = sld [smem:[%s5173_s0 + %s4462_s14]]   ;;  %s4465_s26 = smov 6  }
   0x5   :  { %s4534_s21 = sld [smem:[%s5173_s0 + %s4463_s18]]   ;;  %s4466_s30 = smov 7  }
   0x6   :  { %s4539_s25 = sld [smem:[%s5173_s0 + %s4464_s22]]   ;;  %s4467_s4 = smov 8  }
   0x7   :  { %s4544_s29 = sld [smem:[%s5173_s0 + %s4465_s26]]   ;;  %s4468_s10 = smov 9  }
   0x8   :  { %s4549_s3 = sld [smem:[%s5173_s0 + %s4466_s30]]   ;;  %s4469_s15 = smov 10  }
   0x9   :  { %s4554_s8 = sld [smem:[%s5173_s0 + %s4467_s4]]   ;;  %s4470_s20 = smov 11  }
   0xa   :  { %s4559_s14 = sld [smem:[%s5173_s0 + %s4468_s10]]   ;;  %s4471_s26 = smov 12  }
   0xb   :  { %s4564_s19 = sld [smem:[%s5173_s0 + %s4469_s15]]   ;;  %s4472_s1 = smov 13  }
   0xc   :  { %s4569_s24 = sld [smem:[%s5173_s0 + %s4470_s20]]   ;;  %s4473_s7 = smov 14  }
   0xd   :  { %5199 = sst [smem:[#allocation3_spill]] %s4544_s29  ;;  %s4474_s15 = smov 15  }
   0xe   :  { %5200 = sst [smem:[#allocation4_spill]] %s4549_s3  ;;  %s4475_s22 = smov 16  }
   0xf   :  { %5201 = sst [smem:[#allocation5_spill]] %s4554_s8  ;;  %s4476_s28 = smov 17  }
  0x10   :  { %s4574_s30 = sld [smem:[%s5173_s0 + %s4471_s26]]   ;;  %s4683_s10 = smov 0  }
  0x11   :  { %s4579_s6 = sld [smem:[%s5173_s0 + %s4472_s1]]   ;;  %s4685_s11 = smov 0  }
  0x12   :  { %s4584_s12 = sld [smem:[%s5173_s0 + %s4473_s7]]   ;;  %s4477_s7 = smov 18  }
  0x13   :  { %s4589_s20 = sld [smem:[%s5173_s0 + %s4474_s15]]   ;;  %s4478_s15 = smov 19  }
  0x14   :  { %s4594_s27 = sld [smem:[%s5173_s0 + %s4475_s22]]   ;;  %s4479_s22 = smov 20  }
  0x15   :  { %s4599_s4 = sld [smem:[%s5173_s0 + %s4476_s28]]   ;;  %s4480_s28 = smov 21  }
  0x16   :  { %5202 = sst [smem:[#allocation6_spill]] %s4574_s30 }
  0x17   :  { %5203 = sst [smem:[#allocation7_spill]] %s4579_s6 }
  0x18   :  { %5204 = sst [smem:[#allocation8_spill]] %s4584_s12 }
  0x19   :  { %s4604_s12 = sld [smem:[%s5173_s0 + %s4477_s7]]   ;;  %s4481_s7 = smov 22  }
  0x1a   :  { %s4609_s8 = sld [smem:[%s5173_s0 + %s4478_s15]]   ;;  %s4482_s15 = smov 23  }
  0x1b   :  { %5205 = sst [smem:[#allocation9_spill]] %s4599_s4 }
  0x1c   :  { %s4614_s6 = sld [smem:[%s5173_s0 + %s4479_s22]]   ;;  %s4483_s22 = smov 24  }
  0x1d   :  { %s4619_s3 = sld [smem:[%s5173_s0 + %s4480_s28]]   ;;  %s4484_s28 = smov 25  }
  0x1e   :  { %s4639_s30 = sld [smem:[%s5173_s0 + %s4484_s28]]   ;;  %s4488_s28 = smov 29  }
  0x1f   :  { %5206 = sst [smem:[#allocation10_spill]] %s4604_s12 }
  0x20   :  { %5207 = sst [smem:[#allocation11_spill]] %s4609_s8 }
  0x21   :  { %s4624_s12 = sld [smem:[%s5173_s0 + %s4481_s7]]   ;;  %s4485_s7 = smov 26  }
  0x22   :  { %5208 = sst [smem:[#allocation12_spill]] %s4614_s6 }
  0x23   :  { %5209 = sst [smem:[#allocation13_spill]] %s4619_s3 }
  0x24   :  { %s4629_s8 = sld [smem:[%s5173_s0 + %s4482_s15]]   ;;  %s4486_s15 = smov 27  }
  0x25   :  { %s4634_s6 = sld [smem:[%s5173_s0 + %s4483_s22]]   ;;  %s4487_s22 = smov 28  }
  0x26   :  { %5212 = sst [smem:[#allocation16_spill]] %s4639_s30 }
  0x27   :  { %s4644_s29 = sld [smem:[%s5173_s0 + %s4485_s7]]   ;;  %s4489_s7 = smov 30  }
  0x28   :  { %s4659_s30 = sld [smem:[%s5173_s0 + %s4488_s28]]   ;;  %s4492_s28 = smov 33  }
  0x2a   :  { %5210 = sst [smem:[#allocation14_spill]] %s4629_s8 }
  0x2b   :  { %5211 = sst [smem:[#allocation15_spill]] %s4634_s6 }
  0x2c   :  { %s4649_s8 = sld [smem:[%s5173_s0 + %s4486_s15]]   ;;  %s4490_s15 = smov 31  }
  0x2d   :  { %5213 = sst [smem:[#allocation17_spill]] %s4644_s29 }
  0x2e   :  { %s4654_s6 = sld [smem:[%s5173_s0 + %s4487_s22]]   ;;  %s4491_s22 = smov 32  }
  0x2f   :  { %5216 = sst [smem:[#allocation20_spill]] %s4659_s30 }
  0x30   :  { %s4664_s29 = sld [smem:[%s5173_s0 + %s4489_s7]]   ;;  %s4681_s7 = smov 0  }
  0x31   :  { %s4679_s30 = sld [smem:[%s5173_s0 + %s4492_s28]]  }
  0x32   :  { %5214 = sst [smem:[#allocation18_spill]] %s4649_s8 }
  0x33   :  { %s4669_s8 = sld [smem:[%s5173_s0 + %s4490_s15]]  }
  0x34   :  { %5215 = sst [smem:[#allocation19_spill]] %s4654_s6 }
  0x35   :  { %s4674_s6 = sld [smem:[%s5173_s0 + %s4491_s22]]  }
  0x36 LB: > { %s5217_s4 = sld [smem:[#allocation9_spill]]  ;;  %s89_s0 = sadd.s32 1, %s4454_s10  ;;  %s4454_s10 = sphi %s4683_s10, %s5236_s10   ;;  %s4450_s7 = sphi %s4681_s7, %s5235_s7   ;;  %s4458_s11 = sphi %s4685_s11, %s77_s11  }
  0x37   : > { %s5218_s3 = sld [smem:[#allocation13_spill]]  ;;  %p3704_p0 = scmp.ge.s32.totalorder %s4458_s11, 1 }
  0x38   : > { %p91_p1 = scmp.ge.s32.totalorder %s89_s0, 2  ;;  %p939_p2 = scmp.lt.s32.totalorder %s4458_s11, 3 }
  0x3a   : > { %s5238_s0 = smov (%p91_p1, %s89_s0), 0  ;;  %p940_p3 = pnand %p3704_p0, %p939_p2 }
  0x3b   : > { %p1028_p4 = scmp.lt.s32.totalorder (!%p940_p3), %s4450_s7, 1  ;;  %s4498_s18 = smov (!%p940_p3), 15  }
  0x3c   : > { %943 = sbr.rel (%p940_p3) target bundleno = 3297 (0xce1), region = 152  ;;  %s4499_s22 = smov (!%p940_p3), 16  }
  0x3d   : > { %s4500_s23 = smov (!%p940_p3), 113   ;;  %s4501_s26 = smov (!%p940_p3), 14  }
  0x3e   : > { %s4502_s28 = smov (!%p940_p3), 114   ;;  %s4503_s1 = smov (!%p940_p3), 12  }
  0x3f   : > { %s4504_s2 = smov (!%p940_p3), 116  }
  0x41   : > { %v1076_v0 = vld [vmem:[%s4519_s9 + $0x18] sm:$0xff]  ;;  %v1075_v1 = vld [vmem:[%s4519_s9 + $0x10] sm:$0xff]  ;;  %v4493_v2 = vmov 1   ;;  %v4494_v3 = vmov 0   ;;  %v1074_v4 = vld [vmem:[%s4519_s9 + $0x8] sm:$0xff]  ;;  %v4495_v5 = vmov 2   ;;  %v1097_v20 = vlaneseq }
  0x42   : > { %4323 = vset.pattern.permute.xlu0 %v4493_v2  ;;  %4325 = vset.pattern.permute.xlu1 %v4494_v3  ;;  %v4496_v6 = vmov 3   ;;  %v1073_v7 = vld [vmem:[%s4519_s9] sm:$0xff]  ;;  %v1191_v8 = vld [vmem:[%s4524_s13 + $0x10] sm:$0xff]  ;;  %vm1047_vm0 = vcmask 130048   ;;  %v4497_v9 = vmov 0.0   ;;  %v1192_v10 = vld [vmem:[%s4524_s13 + $0x18] sm:$0xff] }
  0x43   : > { %1118 = vperm.xlu0 %4323, %v1076_v0   ;;  %1089 = vperm.xlu1 %4325, %v1075_v1   ;;  %1051 = vst.msk [vmem:[#allocation2 + $0x18] sm:$0xff] %vm1047_vm0, %v4497_v9  ;;  %1048 = vst.msk [vmem:[#allocation2] sm:$0xff] %vm1047_vm0, %v4497_v9  ;;  %v1190_v11 = vld [vmem:[%s4524_s13 + $0x8] sm:$0xff]  ;;  %v1189_v12 = vld [vmem:[%s4524_s13] sm:$0xff]  ;;  %s5240_s7 = smov (!%p1028_p4, %s4450_s7), 1  ;;  %v1098_v21 = vshrl.u32 %v1097_v20, 7 }
  0x44   : > { %1049 = vst.msk [vmem:[#allocation2 + $0x8] sm:$0xff] %vm1047_vm0, %v4497_v9  ;;  %1050 = vst.msk [vmem:[#allocation2 + $0x10] sm:$0xff] %vm1047_vm0, %v4497_v9  ;;  %s3705_s15 = sshll.u32 %s5240_s7, 2  ;;  %vm1310_vm1 = vcmask 523264   ;;  %v1408_v20 = vld [vmem:[%s4559_s14] sm:$0xff]  ;;  %vm2356_vm2 = vcmask 785408  }
  0x45   : > { %1052 = vst.msk [vmem:[#allocation2 + $0x20] sm:$0xff] %vm1047_vm0, %v4497_v9  ;;  %1053 = vst.msk [vmem:[#allocation2 + $0x28] sm:$0xff] %vm1047_vm0, %v4497_v9  ;;  %s1034_s16 = scalar_lea.vmem %s4514_s5, %s3705_s15  ;;  %v1123_v24 = vsub.s32 1, %v1098_v21  ;;  %v1099_v25 = vsub.s32 0, %v1098_v21  ;;  %v1151_v29 = vsub.s32 2, %v1098_v21  ;;  %v1179_v34 = vsub.s32 3, %v1098_v21  ;;  %3993 = vmatprep.mubr.msk.f32.mxu1 %vm1310_vm1, %v1408_v20 }
  0x46   : > { %1054 = vst.msk [vmem:[#allocation2 + $0x30] sm:$0xff] %vm1047_vm0, %v4497_v9  ;;  %1055 = vst.msk [vmem:[#allocation2 + $0x38] sm:$0xff] %vm1047_vm0, %v4497_v9  ;;  %v1072_v26 = vld [vmem:[%s1034_s16] sm:$0xf]  ;;  %s5219_s15 = sld [smem:[#allocation14_spill]]  ;;  %vm2647_vm3 = vcmask 261120  }
  0x47   : > { %4324 = vset.pattern.permute.xlu0 %v4494_v3  ;;  %4326 = vset.pattern.permute.xlu1 %v4493_v2  ;;  %1056 = vst.msk [vmem:[#allocation2 + $0x40] sm:$0xff] %vm1047_vm0, %v4497_v9  ;;  %1057 = vst.msk [vmem:[#allocation2 + $0x48] sm:$0xff] %vm1047_vm0, %v4497_v9  ;;  %v1124_v28 = vrot.slane %v1072_v26, %v1123_v24  ;;  %v1100_v31 = vrot.slane %v1072_v26, %v1099_v25  ;;  %s5220_s16 = sld [smem:[#allocation3_spill]] }
  0x48   : > { %1094 = vperm.xlu0 %4324, %v1076_v0   ;;  %1114 = vperm.xlu1 %4326, %v1075_v1   ;;  %1058 = vst.msk [vmem:[#allocation2 + $0x50] sm:$0xff] %vm1047_vm0, %v4497_v9  ;;  %1059 = vst.msk [vmem:[#allocation2 + $0x58] sm:$0xff] %vm1047_vm0, %v4497_v9  ;;  %v1152_v33 = vrot.slane %v1072_v26, %v1151_v29  ;;  %v1180_v42 = vrot.slane %v1072_v26, %v1179_v34  ;;  %v1258_v34 = vld [vmem:[%s4589_s20] sm:$0xff] }
  0x49   : > { %1060 = vst.msk [vmem:[#allocation2 + $0x60] sm:$0xff] %vm1047_vm0, %v4497_v9  ;;  %1061 = vst.msk [vmem:[#allocation2 + $0x68] sm:$0xff] %vm1047_vm0, %v4497_v9 }
  0x4a   : > { %1062 = vst.msk [vmem:[#allocation2 + $0x70] sm:$0xff] %vm1047_vm0, %v4497_v9  ;;  %1063 = vst.msk [vmem:[#allocation2 + $0x78] sm:$0xff] %vm1047_vm0, %v4497_v9  ;;  %v1220_v59 = vld [vmem:[#allocation2 + $0x18] sm:$0xff] }
  0x4b   : > { %v4731_v50 = vld [vmem:[#allocation2 + $0x10] sm:$0xff]  ;;  %v1218_v9 = vld [vmem:[#allocation2 + $0x8] sm:$0xff] }
  0x4c   : > { %4327 = vset.pattern.permute.xlu1 %v4495_v5  ;;  %1084 = vperm.xlu0 %4324, %v1074_v4  }
  0x4d   : > { %1146 = vperm.xlu1 %4327, %v1076_v0  }
  0x50   : > { %4332 = vset.pattern.permute.xlu0 %v4495_v5 }
  0x51   : > { %4328 = vset.pattern.permute.xlu1 %v4493_v2  ;;  %1138 = vperm.xlu0 %4332, %v1074_v4  }
  0x52   : > { %1110 = vperm.xlu1 %4328, %v1074_v4  }
  0x55   : > { %4333 = vset.pattern.permute.xlu0 %v4496_v6 }
  0x56   : > { %4329 = vset.pattern.permute.xlu1 %v4495_v5  ;;  %1174 = vperm.xlu0 %4333, %v1076_v0  }
  0x57   : > { %1142 = vperm.xlu1 %4329, %v1075_v1  }
  0x5a   : > { %1166 = vperm.xlu0 %4333, %v1074_v4  }
  0x5b   : > { %4330 = vset.pattern.permute.xlu1 %v4494_v3 }
  0x5c   : > { %1079 = vperm.xlu1 %4330, %v1073_v7  }
  0x5e   : > { %4338 = vset.pattern.permute.xlu0 %v4494_v3 }
  0x5f   : > { %1205 = vperm.xlu0 %4338, %v1191_v8  }
  0x60   : > { %4331 = vset.pattern.permute.xlu1 %v4493_v2 }
  0x61   : > { %1106 = vperm.xlu1 %4331, %v1073_v7  }
  0x65   : > { %4334 = vset.pattern.permute.xlu1 %v4496_v6 }
  0x66   : > { %1170 = vperm.xlu1 %4334, %v1075_v1  }
  0x6a   : > { %4335 = vset.pattern.permute.xlu1 %v4495_v5 }
  0x6b   : > { %1134 = vperm.xlu1 %4335, %v1073_v7  }
  0x6f   : > { %4336 = vset.pattern.permute.xlu1 %v4494_v3 }
  0x70   : > { %1210 = vperm.xlu1 %4336, %v1192_v10  }
  0x74   : > { %4337 = vset.pattern.permute.xlu1 %v4496_v6 }
  0x75   : > { %1162 = vperm.xlu1 %4337, %v1073_v7  }
  0x79   : > { %4339 = vset.pattern.permute.xlu1 %v4494_v3 }
  0x7a   : > { %1200 = vperm.xlu1 %4339, %v1190_v11  }
  0x7e   : > { %1195 = vperm.xlu1 %4339, %v1189_v12  }
  0xbe   : > { %v1090_v13 = vpop.permute.xlu1 %1089  ;;  %v1119_v14 = vpop.permute.xlu0 %1118 }
  0xbf   : > { %v1103_v36 = vmul.f32 %v1100_v31, %v1090_v13  ;;  %v1128_v39 = vmul.f32 %v1124_v28, %v1119_v14  ;;  %v1217_v14 = vld [vmem:[#allocation2] sm:$0xff] }
  0xc3   : > { %v1115_v15 = vpop.permute.xlu1 %1114  ;;  %v1095_v16 = vpop.permute.xlu0 %1094 }
  0xc4   : > { %v1127_v32 = vmul.f32 %v1124_v28, %v1115_v15  ;;  %v1104_v41 = vmul.f32 %v1100_v31, %v1095_v16 }
  0xc6   : > { %v1131_v40 = vadd.f32 %v1127_v32, %v1103_v36  ;;  %v1132_v47 = vadd.f32 %v1128_v39, %v1104_v41  ;;  %v1260_v32 = vld [vmem:[%s4589_s20 + $0x10] sm:$0xff] }
  0xc7   : > { %v1085_v18 = vpop.permute.xlu0 %1084  ;;  %v1414_v36 = vld [vmem:[%s5218_s3 + $0x10] sm:$0xff] }
  0xc8   : > { %v1147_v17 = vpop.permute.xlu1 %1146  ;;  %v1102_v55 = vmul.f32 %v1100_v31, %v1085_v18 }
  0xc9   : > { %v1156_v48 = vmul.f32 %v1152_v33, %v1147_v17 }
  0xcb   : > { %v1160_v54 = vadd.f32 %v1156_v48, %v1132_v47  ;;  %v1409_v47 = vld [vmem:[%s4559_s14 + $0x8] sm:$0xff]  ;;  %v1256_v48 = vld [vmem:[%s4529_s17 + $0x10] sm:$0xff] }
  0xcc   : > { %v1139_v23 = vpop.permute.xlu0 %1138 }
  0xcd   : > { %v1111_v19 = vpop.permute.xlu1 %1110  ;;  %v1154_v62 = vmul.f32 %v1152_v33, %v1139_v23 }
  0xce   : > { %v1126_v56 = vmul.f32 %v1124_v28, %v1111_v19  ;;  %v1254_v19 = vld [vmem:[%s4529_s17] sm:$0xff] }
  0xcf   : > { %3971 = vmatprep.mubr.msk.f32.mxu0 %vm1310_vm1, %v1254_v19 }
  0xd0   : > { %v1130_v61 = vadd.f32 %v1126_v56, %v1102_v55 }
  0xd1   : > { %v1175_v30 = vpop.permute.xlu0 %1174 }
  0xd2   : > { %v1143_v22 = vpop.permute.xlu1 %1142  ;;  %v1184_v51 = vmul.f32 %v1180_v42, %v1175_v30  ;;  %v1158_v2 = vadd.f32 %v1154_v62, %v1130_v61 }
  0xd3   : > { %v1155_v37 = vmul.f32 %v1152_v33, %v1143_v22 }
  0xd4   : > { %v1188_v57 = vadd.f32 %v1184_v51, %v1160_v54  ;;  %v1411_v51 = vld [vmem:[%s4559_s14 + $0x18] sm:$0xff] }
  0xd5   : > { %v1167_v38 = vpop.permute.xlu0 %1166  ;;  %v1159_v44 = vadd.f32 %v1155_v37, %v1131_v40  ;;  %v1412_v37 = vld [vmem:[%s5218_s3] sm:$0xff] }
  0xd6   : > { %v1182_v63 = vmul.f32 %v1180_v42, %v1167_v38 }
  0xd7   : > { %v1080_v27 = vpop.permute.xlu1 %1079 }
  0xd8   : > { %v1101_v3 = vmul.f32 %v1100_v31, %v1080_v27  ;;  %v1186_v7 = vadd.f32 %v1182_v63, %v1158_v2  ;;  %v1259_v31 = vld [vmem:[%s4589_s20 + $0x8] sm:$0xff] }
  0xda   : > { %v1206_v46 = vpop.permute.xlu0 %1205 }
  0xdc   : > { %v1107_v35 = vpop.permute.xlu1 %1106 }
  0xdd   : > { %v1125_v0 = vmul.f32 %v1124_v28, %v1107_v35  ;;  %v1261_v28 = vld [vmem:[%s4589_s20 + $0x18] sm:$0xff]  ;;  %v1413_v35 = vld [vmem:[%s5218_s3 + $0x8] sm:$0xff] }
  0xdf   : > { %v1129_v5 = vadd.f32 %v1125_v0, %v1101_v3 }
  0xe1   : > { %v1171_v43 = vpop.permute.xlu1 %1170 }
  0xe2   : > { %v1183_v45 = vmul.f32 %v1180_v42, %v1171_v43 }
  0xe4   : > { %v1187_v49 = vadd.f32 %v1183_v45, %v1159_v44 }
  0xe6   : > { %v4733_v52 = vadd.f32 %v1206_v46, %v1187_v49  ;;  %v1135_v53 = vpop.permute.xlu1 %1134  ;;  %v1255_v46 = vld [vmem:[%s4529_s17 + $0x8] sm:$0xff]  ;;  %v1410_v49 = vld [vmem:[%s4559_s14 + $0x10] sm:$0xff] }
  0xe7   : > { %v1153_v4 = vmul.f32 %v1152_v33, %v1135_v53  ;;  %v1415_v33 = vld [vmem:[%s5218_s3 + $0x18] sm:$0xff]  ;;  %s5228_s3 = sld [smem:[#allocation19_spill]] }
  0xe8   : > { %1250 = vrot.lane.b32.xlu1 %v4733_v52, %s4498_s18  ;;  %1244 = vst.msk [vmem:[#allocation2 + $0x10] sm:$0xff] %vm1047_vm0, %v4733_v52 }
  0xe9   : > { %v1157_v10 = vadd.f32 %v1153_v4, %v1129_v5 }
  0xeb   : > { %v1211_v58 = vpop.permute.xlu1 %1210 }
  0xec   : > { %v4739_v60 = vadd.f32 %v1211_v58, %v1188_v57 }
  0xee   : > { %1252 = vrot.lane.b32.xlu0 %v4739_v60, %s4498_s18  ;;  %1245 = vst.msk [vmem:[#allocation2 + $0x18] sm:$0xff] %vm1047_vm0, %v4739_v60 }
  0xf0   : > { %v1163_v1 = vpop.permute.xlu1 %1162 }
  0xf1   : > { %v1181_v6 = vmul.f32 %v1180_v42, %v1163_v1 }
  0xf3   : > { %v1185_v12 = vadd.f32 %v1181_v6, %v1157_v10 }
  0xf5   : > { %v1201_v8 = vpop.permute.xlu1 %1200 }
  0xf6   : > { %v4745_v11 = vadd.f32 %v1201_v8, %v1186_v7 }
  0xf8   : > { %1248 = vrot.lane.b32.xlu0 %v4745_v11, %s4498_s18  ;;  %1243 = vst.msk [vmem:[#allocation2 + $0x8] sm:$0xff] %vm1047_vm0, %v4745_v11 }
  0xf9   : > { %v1196_v13 = vpop.permute.xlu1 %1195 }
  0xfa   : > { %v4751_v15 = vadd.f32 %v1196_v13, %v1185_v12 }
  0xfc   : > { %1231 = vrot.lane.b32.xlu0 %v4739_v60, %s4499_s22  ;;  %1246 = vrot.lane.b32.xlu1 %v4751_v15, %s4498_s18  ;;  %1242 = vst.msk [vmem:[#allocation2] sm:$0xff] %vm1047_vm0, %v4751_v15  ;;  %s5221_s18 = sld [smem:[#allocation6_spill]] }
 0x100   : > { %1227 = vrot.lane.b32.xlu0 %v4745_v11, %s4499_s22  ;;  %1229 = vrot.lane.b32.xlu1 %v4733_v52, %s4499_s22 }
 0x104   : > { %1225 = vrot.lane.b32.xlu1 %v4751_v15, %s4499_s22 }
 0x15a   : > { %v1251_v16 = vpop.permute.xlu1 %1250 }
 0x15b   : > { %1298 = vrot.lane.b32.xlu1 %v1251_v16, %s4500_s23 }
 0x160   : > { %v1253_v17 = vpop.permute.xlu0 %1252 }
 0x161   : > { %1300 = vrot.lane.b32.xlu0 %v1253_v17, %s4500_s23 }
 0x16a   : > { %v1249_v18 = vpop.permute.xlu0 %1248 }
 0x16b   : > { %1296 = vrot.lane.b32.xlu0 %v1249_v18, %s4500_s23 }
 0x16e   : > { %v1232_v21 = vpop.permute.xlu0 %1231  ;;  %v1247_v22 = vpop.permute.xlu1 %1246 }
 0x16f   : > { %1294 = vrot.lane.b32.xlu1 %v1247_v22, %s4500_s23  ;;  %v1241_v23 = vsel %vm1047_vm0, %v1220_v59, %v1232_v21 }
 0x170   : > { %1292 = vrot.lane.b32.xlu0 %v1241_v23, %s4500_s23 }
 0x172   : > { %v1228_v24 = vpop.permute.xlu0 %1227  ;;  %v1230_v25 = vpop.permute.xlu1 %1229 }
 0x173   : > { %v1239_v26 = vsel %vm1047_vm0, %v1218_v9, %v1228_v24  ;;  %v1240_v27 = vsel %vm1047_vm0, %v4731_v50, %v1230_v25  ;;  %v1257_v50 = vld [vmem:[%s4529_s17 + $0x18] sm:$0xff] }
 0x174   : > { %1288 = vrot.lane.b32.xlu0 %v1239_v26, %s4500_s23  ;;  %1290 = vrot.lane.b32.xlu1 %v1240_v27, %s4500_s23 }
 0x176   : > { %v1226_v29 = vpop.permute.xlu1 %1225 }
 0x177   : > { %v1238_v30 = vsel %vm1047_vm0, %v1217_v14, %v1226_v29 }
 0x178   : > { %1279 = vperm.xlu0 %4338, %v1261_v28   ;;  %1286 = vrot.lane.b32.xlu1 %v1238_v30, %s4500_s23  ;;  %s5222_s23 = sld [smem:[#allocation10_spill]] }
 0x17c   : > { %1269 = vperm.xlu0 %4338, %v1259_v31   ;;  %1274 = vperm.xlu1 %4339, %v1260_v32  }
 0x180   : > { %1433 = vperm.xlu0 %4338, %v1415_v33   ;;  %1264 = vperm.xlu1 %4339, %v1258_v34   ;;  %v1575_v34 = vld [vmem:[#allocation2 + $0x28] sm:$0xff] }
 0x184   : > { %1423 = vperm.xlu0 %4338, %v1413_v35   ;;  %1428 = vperm.xlu1 %4339, %v1414_v36  }
 0x188   : > { %1418 = vperm.xlu1 %4339, %v1412_v37  }
 0x1cd   : > { %v1299_v39 = vpop.permute.xlu1 %1298 }
 0x1d3   : > { %v1301_v38 = vpop.permute.xlu0 %1300 }
 0x1d4   : > { %3955 = vmatprep.subr.mxu0 %v1301_v38  ;;  %3977 = vmatprep.subr.mxu1 %v1301_v38 }
 0x1d5   : > { %3956 = vmatpush3.msra.mxu0 %v1301_v38  ;;  %3978 = vmatpush3.msra.mxu1 %v1301_v38 }
 0x1d6   : > { %3957 = vmatprep.subr.mxu0 %v1299_v39  ;;  %3979 = vmatprep.subr.mxu1 %v1299_v39 }
 0x1d7   : > { %3958 = vmatpush3.msra.mxu0 %v1299_v39  ;;  %3980 = vmatpush3.msra.mxu1 %v1299_v39 }
 0x1dd   : > { %v1297_v40 = vpop.permute.xlu0 %1296 }
 0x1de   : > { %3959 = vmatprep.subr.mxu0 %v1297_v40  ;;  %3981 = vmatprep.subr.mxu1 %v1297_v40 }
 0x1df   : > { %3960 = vmatpush3.msra.mxu0 %v1297_v40  ;;  %3982 = vmatpush3.msra.mxu1 %v1297_v40 }
 0x1e1   : > { %v1295_v41 = vpop.permute.xlu1 %1294 }
 0x1e2   : > { %v1293_v42 = vpop.permute.xlu0 %1292  ;;  %3961 = vmatprep.subr.mxu0 %v1295_v41  ;;  %3983 = vmatprep.subr.mxu1 %v1295_v41 }
 0x1e3   : > { %3962 = vmatpush3.msra.mxu0 %v1295_v41  ;;  %3984 = vmatpush3.msra.mxu1 %v1295_v41  ;;  %v1574_v41 = vld [vmem:[#allocation2 + $0x20] sm:$0xff] }
 0x1e4   : > { %3963 = vmatprep.subr.mxu0 %v1293_v42  ;;  %3985 = vmatprep.subr.mxu1 %v1293_v42 }
 0x1e5   : > { %3964 = vmatpush3.msra.mxu0 %v1293_v42  ;;  %3986 = vmatpush3.msra.mxu1 %v1293_v42 }
 0x1e6   : > { %v1291_v43 = vpop.permute.xlu1 %1290  ;;  %v1289_v44 = vpop.permute.xlu0 %1288 }
 0x1e7   : > { %3965 = vmatprep.subr.mxu0 %v1291_v43  ;;  %3987 = vmatprep.subr.mxu1 %v1291_v43 }
 0x1e8   : > { %3966 = vmatpush3.msra.mxu0 %v1291_v43  ;;  %3988 = vmatpush3.msra.mxu1 %v1291_v43 }
 0x1e9   : > { %3967 = vmatprep.subr.mxu0 %v1289_v44  ;;  %3989 = vmatprep.subr.mxu1 %v1289_v44 }
 0x1ea   : > { %3968 = vmatpush3.msra.mxu0 %v1289_v44  ;;  %3990 = vmatpush3.msra.mxu1 %v1289_v44  ;;  %v1287_v45 = vpop.permute.xlu1 %1286 }
 0x1eb   : > { %3969 = vmatprep.subr.mxu0 %v1287_v45  ;;  %3991 = vmatprep.subr.mxu1 %v1287_v45 }
 0x1ec   : > { %3970 = vmatpush3.msra.mxu0 %v1287_v45  ;;  %3992 = vmatpush3.msra.mxu1 %v1287_v45  ;;  %v1577_v45 = vld [vmem:[#allocation2 + $0x38] sm:$0xff] }
 0x1ed   : > { %3972 = vmatmul.mubr.msk.f32.vlgmr.msra.gmra.mxu0 %vm1310_vm1, %v1255_v46  ;;  %3994 = vmatmul.mubr.msk.f32.vlgmr.msra.gmra.mxu1 %vm1310_vm1, %v1409_v47 }
 0x1ee   : > { %3974 = vmatprep.mubr.msk.f32.mxu0 %vm1310_vm1, %v1256_v48  ;;  %3996 = vmatprep.mubr.msk.f32.mxu1 %vm1310_vm1, %v1410_v49 }
 0x1f1   : > { %3975 = vmatmul.mubr.msk.f32.gmra.mxu0 %vm1310_vm1, %v1257_v50  ;;  %3997 = vmatmul.mubr.msk.f32.gmra.mxu1 %vm1310_vm1, %v1411_v51  ;;  %v1610_v50 = vld [vmem:[%s4534_s21] sm:$0xff] }
 0x1f2   : > { %v1763_v51 = vld [vmem:[%s4564_s19] sm:$0xff]  ;;  %4015 = vmatprep.mubr.msk.f32.mxu0 %vm1310_vm1, %v1610_v50 }
 0x1f3   : > { %v1280_v53 = vpop.permute.xlu0 %1279  ;;  %4037 = vmatprep.mubr.msk.f32.mxu1 %vm1310_vm1, %v1763_v51 }
 0x1f7   : > { %v1275_v54 = vpop.permute.xlu1 %1274  ;;  %v1270_v55 = vpop.permute.xlu0 %1269 }
 0x1fb   : > { %v1265_v58 = vpop.permute.xlu1 %1264  ;;  %v1434_v17 = vpop.permute.xlu0 %1433 }
 0x1ff   : > { %v1429_v19 = vpop.permute.xlu1 %1428  ;;  %v1424_v22 = vpop.permute.xlu0 %1423 }
 0x203   : > { %v1419_v26 = vpop.permute.xlu1 %1418 }
 0x2ad   : > { %v3973_v56 = vpop.f32.mrf.mxu0  ;;  %v3995_v14 = vpop.f32.mrf.mxu1 }
 0x2ae   : > { %v1395_v57 = vadd.f32 %v3973_v56, %v1270_v55  ;;  %v1520_v23 = vadd.f32 %v3995_v14, %v1424_v22  ;;  %v1613_v22 = vld [vmem:[%s4534_s21 + $0x18] sm:$0xff] }
 0x2af   : > { %v1389_v59 = vpop.f32.mrf.mxu0  ;;  %v1514_v18 = vpop.f32.mrf.mxu1 }
 0x2b0   : > { %v3717_v61 = vmul.f32 -1.442695, %v1395_v57  ;;  %v1390_v62 = vadd.f32 %v1389_v59, %v1265_v58  ;;  %v1515_v29 = vadd.f32 %v1514_v18, %v1419_v26  ;;  %v1611_v18 = vld [vmem:[%s4534_s21 + $0x8] sm:$0xff] }
 0x2b1   : > { %v3976_v63 = vpop.f32.mrf.mxu0  ;;  %v3998_v20 = vpop.f32.mrf.mxu1 }
 0x2b2   : > { %4340 = vpow2.f32 %v3717_v61  ;;  %v3716_v0 = vmul.f32 -1.442695, %v1390_v62  ;;  %v1405_v1 = vadd.f32 %v3976_v63, %v1280_v53  ;;  %v1530_v33 = vadd.f32 %v3998_v20, %v1434_v17  ;;  %v1612_v20 = vld [vmem:[%s4534_s21 + $0x10] sm:$0xff] }
 0x2b3   : > { %v1399_v2 = vpop.f32.mrf.mxu0  ;;  %v1524_v31 = vpop.f32.mrf.mxu1 }
 0x2b4   : > { %4342 = vpow2.f32 %v3716_v0  ;;  %v3719_v3 = vmul.f32 -1.442695, %v1405_v1  ;;  %v1400_v4 = vadd.f32 %v1399_v2, %v1275_v54  ;;  %v1525_v40 = vadd.f32 %v1524_v31, %v1429_v19  ;;  %v1617_v0 = vld [vmem:[%s4594_s27 + $0x18] sm:$0xff]  ;;  %v1616_v1 = vld [vmem:[%s4594_s27 + $0x10] sm:$0xff]  ;;  %v1615_v2 = vld [vmem:[%s4594_s27 + $0x8] sm:$0xff] }
 0x2b5   : > { %v1764_v19 = vld [vmem:[%s4564_s19 + $0x8] sm:$0xff] }
 0x2b6   : > { %4344 = vpow2.f32 %v3719_v3  ;;  %v3718_v5 = vmul.f32 -1.442695, %v1400_v4  ;;  %v1614_v3 = vld [vmem:[%s4594_s27] sm:$0xff]  ;;  %v1770_v4 = vld [vmem:[%s4624_s12 + $0x18] sm:$0xff] }
 0x2b8   : > { %4346 = vpow2.f32 %v3718_v5  ;;  %v1769_v5 = vld [vmem:[%s4624_s12 + $0x10] sm:$0xff] }
 0x2bf   : > { %v4341_v6 = vpop.eup %4340 }
 0x2c0   : > { %v1546_v7 = vadd.f32 1.0, %v4341_v6  ;;  %v1768_v6 = vld [vmem:[%s4624_s12 + $0x8] sm:$0xff] }
 0x2c1   : > { %v4343_v8 = vpop.eup %4342 }
 0x2c2   : > { %4348 = vrcp.f32 %v1546_v7  ;;  %v1545_v9 = vadd.f32 1.0, %v4343_v8  ;;  %v1767_v7 = vld [vmem:[%s4624_s12] sm:$0xff] }
 0x2c3   : > { %v4345_v10 = vpop.eup %4344 }
 0x2c4   : > { %4350 = vrcp.f32 %v1545_v9  ;;  %v1548_v12 = vadd.f32 1.0, %v4345_v10 }
 0x2c5   : > { %v4347_v13 = vpop.eup %4346 }
 0x2c6   : > { %4352 = vrcp.f32 %v1548_v12  ;;  %v1547_v16 = vadd.f32 1.0, %v4347_v13 }
 0x2c8   : > { %4354 = vrcp.f32 %v1547_v16 }
 0x2cf   : > { %v4349_v21 = vpop.eup %4348 }
 0x2d0   : > { %v1562_v24 = vsub.f32 1.0, %v4349_v21  ;;  %v1558_v27 = vmul.f32 %v4349_v21, %v1520_v23  ;;  %v1765_v21 = vld [vmem:[%s4564_s19 + $0x10] sm:$0xff]  ;;  %v1766_v23 = vld [vmem:[%s4564_s19 + $0x18] sm:$0xff] }
 0x2d1   : > { %v4351_v25 = vpop.eup %4350 }
 0x2d2   : > { %v1566_v28 = vmul.f32 %v1562_v24, %v4745_v11  ;;  %v1561_v30 = vsub.f32 1.0, %v4351_v25  ;;  %v1557_v36 = vmul.f32 %v4351_v25, %v1515_v29 }
 0x2d3   : > { %v4353_v32 = vpop.eup %4352 }
 0x2d4   : > { %v4795_v35 = vadd.f32 %v1566_v28, %v1558_v27  ;;  %v1565_v37 = vmul.f32 %v1561_v30, %v4751_v15  ;;  %v1564_v38 = vsub.f32 1.0, %v4353_v32  ;;  %v1560_v43 = vmul.f32 %v4353_v32, %v1530_v33  ;;  %v1576_v15 = vld [vmem:[#allocation2 + $0x30] sm:$0xff] }
 0x2d5   : > { %v4355_v39 = vpop.eup %4354 }
 0x2d6   : > { %v4798_v42 = vadd.f32 %v1565_v37, %v1557_v36  ;;  %v1568_v11 = vmul.f32 %v1564_v38, %v4739_v60  ;;  %v1563_v44 = vsub.f32 1.0, %v4355_v39  ;;  %1599 = vst.msk [vmem:[#allocation2 + $0x28] sm:$0xff] %vm1047_vm0, %v4795_v35  ;;  %v1559_v47 = vmul.f32 %v4355_v39, %v1525_v40 }
 0x2d8   : > { %v4803_v46 = vadd.f32 %v1568_v11, %v1560_v43  ;;  %v1567_v48 = vmul.f32 %v1563_v44, %v4733_v52  ;;  %1598 = vst.msk [vmem:[#allocation2 + $0x20] sm:$0xff] %vm1047_vm0, %v4798_v42 }
 0x2da   : > { %v4808_v49 = vadd.f32 %v1567_v48, %v1559_v47  ;;  %1608 = vrot.lane.b32.xlu0 %v4803_v46, %s4501_s26  ;;  %1601 = vst.msk [vmem:[#allocation2 + $0x38] sm:$0xff] %vm1047_vm0, %v4803_v46 }
 0x2dc   : > { %1606 = vrot.lane.b32.xlu1 %v4808_v49, %s4501_s26  ;;  %1600 = vst.msk [vmem:[#allocation2 + $0x30] sm:$0xff] %vm1047_vm0, %v4808_v49 }
 0x2de   : > { %1604 = vrot.lane.b32.xlu0 %v4795_v35, %s4501_s26 }
 0x2e0   : > { %1602 = vrot.lane.b32.xlu1 %v4798_v42, %s4501_s26  ;;  %s4505_s26 = smov 120  }
 0x2e2   : > { %1588 = vrot.lane.b32.xlu0 %v4803_v46, %s4499_s22 }
 0x2e4   : > { %1586 = vrot.lane.b32.xlu1 %v4808_v49, %s4499_s22 }
 0x2e6   : > { %1584 = vrot.lane.b32.xlu0 %v4795_v35, %s4499_s22 }
 0x2e8   : > { %1582 = vrot.lane.b32.xlu1 %v4798_v42, %s4499_s22 }
 0x34c   : > { %v1609_v52 = vpop.permute.xlu0 %1608 }
 0x34d   : > { %1656 = vrot.lane.b32.xlu0 %v1609_v52, %s4502_s28 }
 0x34e   : > { %v1607_v60 = vpop.permute.xlu1 %1606 }
 0x34f   : > { %1654 = vrot.lane.b32.xlu1 %v1607_v60, %s4502_s28 }
 0x350   : > { %v1605_v53 = vpop.permute.xlu0 %1604 }
 0x351   : > { %1652 = vrot.lane.b32.xlu0 %v1605_v53, %s4502_s28 }
 0x352   : > { %v1603_v54 = vpop.permute.xlu1 %1602 }
 0x353   : > { %1650 = vrot.lane.b32.xlu1 %v1603_v54, %s4502_s28 }
 0x354   : > { %v1589_v55 = vpop.permute.xlu0 %1588 }
 0x355   : > { %v1597_v56 = vsel %vm1047_vm0, %v1577_v45, %v1589_v55 }
 0x356   : > { %1648 = vrot.lane.b32.xlu0 %v1597_v56, %s4502_s28  ;;  %v1587_v57 = vpop.permute.xlu1 %1586 }
 0x357   : > { %v1596_v58 = vsel %vm1047_vm0, %v1576_v15, %v1587_v57 }
 0x358   : > { %v1585_v59 = vpop.permute.xlu0 %1584  ;;  %1646 = vrot.lane.b32.xlu1 %v1596_v58, %s4502_s28 }
 0x359   : > { %v1595_v61 = vsel %vm1047_vm0, %v1575_v34, %v1585_v59 }
 0x35a   : > { %1644 = vrot.lane.b32.xlu0 %v1595_v61, %s4502_s28  ;;  %v1583_v62 = vpop.permute.xlu1 %1582 }
 0x35b   : > { %v1594_v63 = vsel %vm1047_vm0, %v1574_v41, %v1583_v62 }
 0x35c   : > { %1642 = vrot.lane.b32.xlu1 %v1594_v63, %s4502_s28  ;;  %s5224_s28 = sld [smem:[#allocation11_spill]] }
 0x35e   : > { %1635 = vperm.xlu0 %4338, %v1617_v0  }
 0x360   : > { %1630 = vperm.xlu1 %4339, %v1616_v1  }
 0x362   : > { %1625 = vperm.xlu0 %4338, %v1615_v2  }
 0x364   : > { %1620 = vperm.xlu1 %4339, %v1614_v3  }
 0x366   : > { %1788 = vperm.xlu0 %4338, %v1770_v4   ;;  %v1930_v4 = vld [vmem:[#allocation2 + $0x48] sm:$0xff] }
 0x368   : > { %1783 = vperm.xlu1 %4339, %v1769_v5  }
 0x36a   : > { %1778 = vperm.xlu0 %4338, %v1768_v6  }
 0x36c   : > { %1773 = vperm.xlu1 %4339, %v1767_v7  }
 0x3bf   : > { %v1657_v8 = vpop.permute.xlu0 %1656 }
 0x3c0   : > { %3999 = vmatprep.subr.mxu0 %v1657_v8  ;;  %4021 = vmatprep.subr.mxu1 %v1657_v8 }
 0x3c1   : > { %4000 = vmatpush3.msra.mxu0 %v1657_v8  ;;  %4022 = vmatpush3.msra.mxu1 %v1657_v8  ;;  %v1655_v9 = vpop.permute.xlu1 %1654 }
 0x3c2   : > { %4001 = vmatprep.subr.mxu0 %v1655_v9  ;;  %4023 = vmatprep.subr.mxu1 %v1655_v9 }
 0x3c3   : > { %v1653_v10 = vpop.permute.xlu0 %1652  ;;  %4002 = vmatpush3.msra.mxu0 %v1655_v9  ;;  %4024 = vmatpush3.msra.mxu1 %v1655_v9 }
 0x3c4   : > { %4003 = vmatprep.subr.mxu0 %v1653_v10  ;;  %4025 = vmatprep.subr.mxu1 %v1653_v10 }
 0x3c5   : > { %4004 = vmatpush3.msra.mxu0 %v1653_v10  ;;  %4026 = vmatpush3.msra.mxu1 %v1653_v10  ;;  %v1651_v12 = vpop.permute.xlu1 %1650 }
 0x3c6   : > { %4005 = vmatprep.subr.mxu0 %v1651_v12  ;;  %4027 = vmatprep.subr.mxu1 %v1651_v12 }
 0x3c7   : > { %4006 = vmatpush3.msra.mxu0 %v1651_v12  ;;  %4028 = vmatpush3.msra.mxu1 %v1651_v12  ;;  %v1929_v12 = vld [vmem:[#allocation2 + $0x40] sm:$0xff] }
 0x3c8   : > { %v1649_v13 = vpop.permute.xlu0 %1648 }
 0x3c9   : > { %4007 = vmatprep.subr.mxu0 %v1649_v13  ;;  %4029 = vmatprep.subr.mxu1 %v1649_v13 }
 0x3ca   : > { %4008 = vmatpush3.msra.mxu0 %v1649_v13  ;;  %4030 = vmatpush3.msra.mxu1 %v1649_v13  ;;  %v1647_v14 = vpop.permute.xlu1 %1646 }
 0x3cb   : > { %4009 = vmatprep.subr.mxu0 %v1647_v14  ;;  %4031 = vmatprep.subr.mxu1 %v1647_v14 }
 0x3cc   : > { %v1645_v16 = vpop.permute.xlu0 %1644  ;;  %4010 = vmatpush3.msra.mxu0 %v1647_v14  ;;  %4032 = vmatpush3.msra.mxu1 %v1647_v14 }
 0x3cd   : > { %4011 = vmatprep.subr.mxu0 %v1645_v16  ;;  %4033 = vmatprep.subr.mxu1 %v1645_v16 }
 0x3ce   : > { %4012 = vmatpush3.msra.mxu0 %v1645_v16  ;;  %4034 = vmatpush3.msra.mxu1 %v1645_v16  ;;  %v1643_v17 = vpop.permute.xlu1 %1642 }
 0x3cf   : > { %4013 = vmatprep.subr.mxu0 %v1643_v17  ;;  %4035 = vmatprep.subr.mxu1 %v1643_v17 }
 0x3d0   : > { %4014 = vmatpush3.msra.mxu0 %v1643_v17  ;;  %4036 = vmatpush3.msra.mxu1 %v1643_v17  ;;  %v1932_v17 = vld [vmem:[#allocation2 + $0x58] sm:$0xff] }
 0x3d1   : > { %4016 = vmatmul.mubr.msk.f32.vlgmr.msra.gmra.mxu0 %vm1310_vm1, %v1611_v18  ;;  %4038 = vmatmul.mubr.msk.f32.vlgmr.msra.gmra.mxu1 %vm1310_vm1, %v1764_v19 }
 0x3d2   : > { %4018 = vmatprep.mubr.msk.f32.mxu0 %vm1310_vm1, %v1612_v20  ;;  %4040 = vmatprep.mubr.msk.f32.mxu1 %vm1310_vm1, %v1765_v21 }
 0x3d5   : > { %4019 = vmatmul.mubr.msk.f32.gmra.mxu0 %vm1310_vm1, %v1613_v22  ;;  %4041 = vmatmul.mubr.msk.f32.gmra.mxu1 %vm1310_vm1, %v1766_v23  ;;  %v1965_v22 = vld [vmem:[%s4539_s25] sm:$0xff] }
 0x3d6   : > { %v2118_v23 = vld [vmem:[%s4569_s24] sm:$0xff]  ;;  %4059 = vmatprep.mubr.msk.f32.mxu0 %vm1310_vm1, %v1965_v22 }
 0x3d7   : > { %4081 = vmatprep.mubr.msk.f32.mxu1 %vm1310_vm1, %v2118_v23 }
 0x3d9   : > { %v1636_v24 = vpop.permute.xlu0 %1635 }
 0x3db   : > { %v1631_v25 = vpop.permute.xlu1 %1630 }
 0x3dd   : > { %v1626_v26 = vpop.permute.xlu0 %1625 }
 0x3df   : > { %v1621_v29 = vpop.permute.xlu1 %1620 }
 0x3e1   : > { %v1789_v60 = vpop.permute.xlu0 %1788 }
 0x3e3   : > { %v1784_v51 = vpop.permute.xlu1 %1783 }
 0x3e5   : > { %v1779_v55 = vpop.permute.xlu0 %1778 }
 0x3e7   : > { %v1774_v59 = vpop.permute.xlu1 %1773 }
 0x491   : > { %v4017_v27 = vpop.f32.mrf.mxu0  ;;  %v4039_v15 = vpop.f32.mrf.mxu1 }
 0x492   : > { %v1750_v28 = vadd.f32 %v4017_v27, %v1626_v26  ;;  %v1875_v56 = vadd.f32 %v4039_v15, %v1779_v55  ;;  %v1968_v55 = vld [vmem:[%s4539_s25 + $0x18] sm:$0xff] }
 0x493   : > { %v1744_v30 = vpop.f32.mrf.mxu0  ;;  %v1869_v50 = vpop.f32.mrf.mxu1 }
 0x494   : > { %v3729_v31 = vmul.f32 -1.442695, %v1750_v28  ;;  %v1745_v32 = vadd.f32 %v1744_v30, %v1621_v29  ;;  %v1870_v63 = vadd.f32 %v1869_v50, %v1774_v59  ;;  %v1966_v50 = vld [vmem:[%s4539_s25 + $0x8] sm:$0xff] }
 0x495   : > { %v4020_v33 = vpop.f32.mrf.mxu0  ;;  %v4042_v53 = vpop.f32.mrf.mxu1 }
 0x496   : > { %4356 = vpow2.f32 %v3729_v31  ;;  %v3728_v34 = vmul.f32 -1.442695, %v1745_v32  ;;  %v1760_v36 = vadd.f32 %v4020_v33, %v1636_v24  ;;  %v1885_v3 = vadd.f32 %v4042_v53, %v1789_v60  ;;  %v1967_v53 = vld [vmem:[%s4539_s25 + $0x10] sm:$0xff] }
 0x497   : > { %v1754_v37 = vpop.f32.mrf.mxu0  ;;  %v1879_v1 = vpop.f32.mrf.mxu1 }
 0x498   : > { %4358 = vpow2.f32 %v3728_v34  ;;  %v3731_v38 = vmul.f32 -1.442695, %v1760_v36  ;;  %v1755_v39 = vadd.f32 %v1754_v37, %v1631_v25  ;;  %v1880_v10 = vadd.f32 %v1879_v1, %v1784_v51  ;;  %v1972_v34 = vld [vmem:[%s5217_s4 + $0x18] sm:$0xff]  ;;  %v1971_v36 = vld [vmem:[%s5217_s4 + $0x10] sm:$0xff]  ;;  %v1970_v37 = vld [vmem:[%s5217_s4 + $0x8] sm:$0xff] }
 0x499   : > { %v2119_v51 = vld [vmem:[%s4569_s24 + $0x8] sm:$0xff] }
 0x49a   : > { %4360 = vpow2.f32 %v3731_v38  ;;  %v3730_v40 = vmul.f32 -1.442695, %v1755_v39  ;;  %v1969_v38 = vld [vmem:[%s5217_s4] sm:$0xff]  ;;  %v2125_v39 = vld [vmem:[%s5219_s15 + $0x18] sm:$0xff]  ;;  %s5232_s4 = sld [smem:[#allocation8_spill]] }
 0x49c   : > { %4362 = vpow2.f32 %v3730_v40  ;;  %v2124_v40 = vld [vmem:[%s5219_s15 + $0x10] sm:$0xff] }
 0x4a3   : > { %v4357_v41 = vpop.eup %4356 }
 0x4a4   : > { %v1901_v43 = vadd.f32 1.0, %v4357_v41  ;;  %v2123_v41 = vld [vmem:[%s5219_s15 + $0x8] sm:$0xff] }
 0x4a5   : > { %v4359_v11 = vpop.eup %4358 }
 0x4a6   : > { %4364 = vrcp.f32 %v1901_v43  ;;  %v1900_v44 = vadd.f32 1.0, %v4359_v11  ;;  %v2122_v43 = vld [vmem:[%s5219_s15] sm:$0xff] }
 0x4a7   : > { %v4361_v45 = vpop.eup %4360 }
 0x4a8   : > { %4366 = vrcp.f32 %v1900_v44  ;;  %v1903_v47 = vadd.f32 1.0, %v4361_v45 }
 0x4a9   : > { %v4363_v48 = vpop.eup %4362 }
 0x4aa   : > { %4368 = vrcp.f32 %v1903_v47  ;;  %v1902_v52 = vadd.f32 1.0, %v4363_v48 }
 0x4ac   : > { %4370 = vrcp.f32 %v1902_v52 }
 0x4b3   : > { %v4365_v54 = vpop.eup %4364 }
 0x4b4   : > { %v1917_v57 = vsub.f32 1.0, %v4365_v54  ;;  %v1913_v61 = vmul.f32 %v4365_v54, %v1875_v56  ;;  %v2120_v54 = vld [vmem:[%s4569_s24 + $0x10] sm:$0xff]  ;;  %v2121_v56 = vld [vmem:[%s4569_s24 + $0x18] sm:$0xff] }
 0x4b5   : > { %v4367_v58 = vpop.eup %4366 }
 0x4b6   : > { %v1921_v62 = vmul.f32 %v1917_v57, %v4795_v35  ;;  %v1916_v0 = vsub.f32 1.0, %v4367_v58  ;;  %v1912_v6 = vmul.f32 %v4367_v58, %v1870_v63 }
 0x4b7   : > { %v4369_v2 = vpop.eup %4368 }
 0x4b8   : > { %v4855_v5 = vadd.f32 %v1921_v62, %v1913_v61  ;;  %v1920_v7 = vmul.f32 %v1916_v0, %v4798_v42  ;;  %v1919_v8 = vsub.f32 1.0, %v4369_v2  ;;  %v1915_v14 = vmul.f32 %v4369_v2, %v1885_v3  ;;  %v1931_v42 = vld [vmem:[#allocation2 + $0x50] sm:$0xff] }
 0x4b9   : > { %v4371_v9 = vpop.eup %4370 }
 0x4ba   : > { %v4858_v13 = vadd.f32 %v1920_v7, %v1912_v6  ;;  %v1923_v35 = vmul.f32 %v1919_v8, %v4803_v46  ;;  %v1918_v16 = vsub.f32 1.0, %v4371_v9  ;;  %1954 = vst.msk [vmem:[#allocation2 + $0x48] sm:$0xff] %vm1047_vm0, %v4855_v5  ;;  %v1914_v19 = vmul.f32 %v4371_v9, %v1880_v10 }
 0x4bc   : > { %v4863_v18 = vadd.f32 %v1923_v35, %v1915_v14  ;;  %v1922_v20 = vmul.f32 %v1918_v16, %v4808_v49  ;;  %1953 = vst.msk [vmem:[#allocation2 + $0x40] sm:$0xff] %vm1047_vm0, %v4858_v13 }
 0x4be   : > { %v4868_v21 = vadd.f32 %v1922_v20, %v1914_v19  ;;  %1963 = vrot.lane.b32.xlu0 %v4863_v18, %s4503_s1  ;;  %1956 = vst.msk [vmem:[#allocation2 + $0x58] sm:$0xff] %vm1047_vm0, %v4863_v18 }
 0x4c0   : > { %1961 = vrot.lane.b32.xlu1 %v4868_v21, %s4503_s1  ;;  %1955 = vst.msk [vmem:[#allocation2 + $0x50] sm:$0xff] %vm1047_vm0, %v4868_v21 }
 0x4c2   : > { %1959 = vrot.lane.b32.xlu0 %v4855_v5, %s4503_s1 }
 0x4c4   : > { %1957 = vrot.lane.b32.xlu1 %v4858_v13, %s4503_s1  ;;  %s5225_s1 = sld [smem:[#allocation16_spill]] }
 0x4c6   : > { %1943 = vrot.lane.b32.xlu0 %v4863_v18, %s4499_s22 }
 0x4c8   : > { %1941 = vrot.lane.b32.xlu1 %v4868_v21, %s4499_s22 }
 0x4ca   : > { %1939 = vrot.lane.b32.xlu0 %v4855_v5, %s4499_s22 }
 0x4cc   : > { %1937 = vrot.lane.b32.xlu1 %v4858_v13, %s4499_s22 }
 0x530   : > { %v1964_v46 = vpop.permute.xlu0 %1963 }
 0x531   : > { %2011 = vrot.lane.b32.xlu0 %v1964_v46, %s4504_s2 }
 0x532   : > { %v1962_v49 = vpop.permute.xlu1 %1961 }
 0x533   : > { %2009 = vrot.lane.b32.xlu1 %v1962_v49, %s4504_s2 }
 0x534   : > { %v1960_v24 = vpop.permute.xlu0 %1959 }
 0x535   : > { %2007 = vrot.lane.b32.xlu0 %v1960_v24, %s4504_s2 }
 0x536   : > { %v1958_v25 = vpop.permute.xlu1 %1957 }
 0x537   : > { %2005 = vrot.lane.b32.xlu1 %v1958_v25, %s4504_s2 }
 0x538   : > { %v1944_v26 = vpop.permute.xlu0 %1943 }
 0x539   : > { %v1952_v27 = vsel %vm1047_vm0, %v1932_v17, %v1944_v26 }
 0x53a   : > { %2003 = vrot.lane.b32.xlu0 %v1952_v27, %s4504_s2  ;;  %v1942_v28 = vpop.permute.xlu1 %1941 }
 0x53b   : > { %v1951_v29 = vsel %vm1047_vm0, %v1931_v42, %v1942_v28 }
 0x53c   : > { %v1940_v30 = vpop.permute.xlu0 %1939  ;;  %2001 = vrot.lane.b32.xlu1 %v1951_v29, %s4504_s2 }
 0x53d   : > { %v1950_v31 = vsel %vm1047_vm0, %v1930_v4, %v1940_v30 }
 0x53e   : > { %1999 = vrot.lane.b32.xlu0 %v1950_v31, %s4504_s2  ;;  %v1938_v32 = vpop.permute.xlu1 %1937 }
 0x53f   : > { %v1949_v33 = vsel %vm1047_vm0, %v1929_v12, %v1938_v32 }
 0x540   : > { %1997 = vrot.lane.b32.xlu1 %v1949_v33, %s4504_s2  ;;  %s5226_s2 = sld [smem:[#allocation12_spill]] }
 0x542   : > { %1990 = vperm.xlu0 %4338, %v1972_v34  }
 0x544   : > { %1985 = vperm.xlu1 %4339, %v1971_v36  }
 0x546   : > { %1980 = vperm.xlu0 %4338, %v1970_v37  }
 0x548   : > { %1975 = vperm.xlu1 %4339, %v1969_v38  }
 0x54a   : > { %2143 = vperm.xlu0 %4338, %v2125_v39   ;;  %v2285_v39 = vld [vmem:[#allocation2 + $0x68] sm:$0xff] }
 0x54c   : > { %2138 = vperm.xlu1 %4339, %v2124_v40  }
 0x54e   : > { %2133 = vperm.xlu0 %4338, %v2123_v41  }
 0x550   : > { %2128 = vperm.xlu1 %4339, %v2122_v43  }
 0x5a3   : > { %v2012_v11 = vpop.permute.xlu0 %2011 }
 0x5a4   : > { %4043 = vmatprep.subr.mxu0 %v2012_v11  ;;  %4065 = vmatprep.subr.mxu1 %v2012_v11 }
 0x5a5   : > { %4044 = vmatpush3.msra.mxu0 %v2012_v11  ;;  %4066 = vmatpush3.msra.mxu1 %v2012_v11  ;;  %v2010_v44 = vpop.permute.xlu1 %2009 }
 0x5a6   : > { %4045 = vmatprep.subr.mxu0 %v2010_v44  ;;  %4067 = vmatprep.subr.mxu1 %v2010_v44 }
 0x5a7   : > { %v2008_v45 = vpop.permute.xlu0 %2007  ;;  %4046 = vmatpush3.msra.mxu0 %v2010_v44  ;;  %4068 = vmatpush3.msra.mxu1 %v2010_v44 }
 0x5a8   : > { %4047 = vmatprep.subr.mxu0 %v2008_v45  ;;  %4069 = vmatprep.subr.mxu1 %v2008_v45 }
 0x5a9   : > { %4048 = vmatpush3.msra.mxu0 %v2008_v45  ;;  %4070 = vmatpush3.msra.mxu1 %v2008_v45  ;;  %v2006_v47 = vpop.permute.xlu1 %2005 }
 0x5aa   : > { %4049 = vmatprep.subr.mxu0 %v2006_v47  ;;  %4071 = vmatprep.subr.mxu1 %v2006_v47 }
 0x5ab   : > { %4050 = vmatpush3.msra.mxu0 %v2006_v47  ;;  %4072 = vmatpush3.msra.mxu1 %v2006_v47  ;;  %v2284_v47 = vld [vmem:[#allocation2 + $0x60] sm:$0xff] }
 0x5ac   : > { %v2004_v48 = vpop.permute.xlu0 %2003 }
 0x5ad   : > { %4051 = vmatprep.subr.mxu0 %v2004_v48  ;;  %4073 = vmatprep.subr.mxu1 %v2004_v48 }
 0x5ae   : > { %4052 = vmatpush3.msra.mxu0 %v2004_v48  ;;  %4074 = vmatpush3.msra.mxu1 %v2004_v48  ;;  %v2002_v15 = vpop.permute.xlu1 %2001 }
 0x5af   : > { %4053 = vmatprep.subr.mxu0 %v2002_v15  ;;  %4075 = vmatprep.subr.mxu1 %v2002_v15 }
 0x5b0   : > { %v2000_v52 = vpop.permute.xlu0 %1999  ;;  %4054 = vmatpush3.msra.mxu0 %v2002_v15  ;;  %4076 = vmatpush3.msra.mxu1 %v2002_v15 }
 0x5b1   : > { %4055 = vmatprep.subr.mxu0 %v2000_v52  ;;  %4077 = vmatprep.subr.mxu1 %v2000_v52 }
 0x5b2   : > { %4056 = vmatpush3.msra.mxu0 %v2000_v52  ;;  %4078 = vmatpush3.msra.mxu1 %v2000_v52  ;;  %v1998_v60 = vpop.permute.xlu1 %1997 }
 0x5b3   : > { %4057 = vmatprep.subr.mxu0 %v1998_v60  ;;  %4079 = vmatprep.subr.mxu1 %v1998_v60 }
 0x5b4   : > { %4058 = vmatpush3.msra.mxu0 %v1998_v60  ;;  %4080 = vmatpush3.msra.mxu1 %v1998_v60  ;;  %v2287_v60 = vld [vmem:[#allocation2 + $0x78] sm:$0xff] }
 0x5b5   : > { %4060 = vmatmul.mubr.msk.f32.vlgmr.msra.gmra.mxu0 %vm1310_vm1, %v1966_v50  ;;  %4082 = vmatmul.mubr.msk.f32.vlgmr.msra.gmra.mxu1 %vm1310_vm1, %v2119_v51 }
 0x5b6   : > { %4062 = vmatprep.mubr.msk.f32.mxu0 %vm1310_vm1, %v1967_v53  ;;  %4084 = vmatprep.mubr.msk.f32.mxu1 %vm1310_vm1, %v2120_v54 }
 0x5b9   : > { %4063 = vmatmul.mubr.msk.f32.gmra.mxu0 %vm1310_vm1, %v1968_v55  ;;  %4085 = vmatmul.mubr.msk.f32.gmra.mxu1 %vm1310_vm1, %v2121_v56 }
 0x5bd   : > { %v1991_v57 = vpop.permute.xlu0 %1990 }
 0x5bf   : > { %v1986_v58 = vpop.permute.xlu1 %1985 }
 0x5c1   : > { %v1981_v59 = vpop.permute.xlu0 %1980 }
 0x5c3   : > { %v1976_v63 = vpop.permute.xlu1 %1975 }
 0x5c5   : > { %v2144_v49 = vpop.permute.xlu0 %2143 }
 0x5c7   : > { %v2139_v23 = vpop.permute.xlu1 %2138 }
 0x5c9   : > { %v2134_v26 = vpop.permute.xlu0 %2133 }
 0x5cb   : > { %v2129_v30 = vpop.permute.xlu1 %2128 }
 0x675   : > { %v4061_v61 = vpop.f32.mrf.mxu0  ;;  %v4083_v42 = vpop.f32.mrf.mxu1 }
 0x676   : > { %v2105_v62 = vadd.f32 %v4061_v61, %v1981_v59  ;;  %v2230_v27 = vadd.f32 %v4083_v42, %v2134_v26  ;;  %v2454_v59 = vld [vmem:[%s5221_s18] sm:$0xff]  ;;  %v2916_v42 = vld [vmem:[%s5226_s2 + $0x10] sm:$0xff]  ;;  %v3207_v26 = vld [vmem:[%s5228_s3 + $0x18] sm:$0xff] }
 0x677   : > { %v2099_v0 = vpop.f32.mrf.mxu0  ;;  %v2224_v22 = vpop.f32.mrf.mxu1  ;;  %4141 = vmatprep.mubr.msk.f32.mxu1 %vm2356_vm2, %v2454_v59 }
 0x678   : > { %v3741_v1 = vmul.f32 -1.442695, %v2105_v62  ;;  %v2100_v2 = vadd.f32 %v2099_v0, %v1976_v63  ;;  %v2225_v33 = vadd.f32 %v2224_v22, %v2129_v30  ;;  %v2335_v0 = vld [vmem:[%s5222_s23 + $0x18] sm:$0xff] }
 0x679   : > { %v4064_v3 = vpop.f32.mrf.mxu0  ;;  %v4086_v24 = vpop.f32.mrf.mxu1  ;;  %v3336_v30 = vld [vmem:[%s4664_s29 + $0x18] sm:$0xff] }
 0x67a   : > { %4372 = vpow2.f32 %v3741_v1  ;;  %v3740_v4 = vmul.f32 -1.442695, %v2100_v2  ;;  %v2115_v6 = vadd.f32 %v4064_v3, %v1991_v57  ;;  %v2240_v38 = vadd.f32 %v4086_v24, %v2144_v49  ;;  %v2334_v1 = vld [vmem:[%s5222_s23 + $0x10] sm:$0xff]  ;;  %v2333_v2 = vld [vmem:[%s5222_s23 + $0x8] sm:$0xff]  ;;  %v2332_v3 = vld [vmem:[%s5222_s23] sm:$0xff] }
 0x67b   : > { %v2109_v7 = vpop.f32.mrf.mxu0  ;;  %v2234_v36 = vpop.f32.mrf.mxu1  ;;  %v2914_v49 = vld [vmem:[%s5226_s2] sm:$0xff] }
 0x67c   : > { %4374 = vpow2.f32 %v3740_v4  ;;  %v3743_v8 = vmul.f32 -1.442695, %v2115_v6  ;;  %v2110_v9 = vadd.f32 %v2109_v7, %v1986_v58  ;;  %v2235_v45 = vadd.f32 %v2234_v36, %v2139_v23  ;;  %v2328_v58 = vld [vmem:[%s5220_s16] sm:$0xff]  ;;  %v3463_v36 = vld [vmem:[%s4674_s6 + $0x8] sm:$0xff] }
 0x67d   : > { %4111 = vmatprep.mubr.msk.f32.mxu0 %vm2356_vm2, %v2328_v58 }
 0x67e   : > { %4376 = vpow2.f32 %v3743_v8  ;;  %v3742_v10 = vmul.f32 -1.442695, %v2110_v9  ;;  %v2626_v9 = vld [vmem:[%s5224_s28 + $0x18] sm:$0xff] }
 0x680   : > { %4378 = vpow2.f32 %v3742_v10  ;;  %v2625_v10 = vld [vmem:[%s5224_s28 + $0x10] sm:$0xff] }
 0x687   : > { %v4373_v12 = vpop.eup %4372 }
 0x688   : > { %v2256_v14 = vadd.f32 1.0, %v4373_v12  ;;  %v2624_v12 = vld [vmem:[%s5224_s28 + $0x8] sm:$0xff] }
 0x689   : > { %v4375_v35 = vpop.eup %4374 }
 0x68a   : > { %4380 = vrcp.f32 %v2256_v14  ;;  %v2255_v16 = vadd.f32 1.0, %v4375_v35  ;;  %v2623_v14 = vld [vmem:[%s5224_s28] sm:$0xff]  ;;  %v2752_v35 = vld [vmem:[%s5225_s1 + $0x18] sm:$0xff] }
 0x68b   : > { %v4377_v17 = vpop.eup %4376 }
 0x68c   : > { %4382 = vrcp.f32 %v2255_v16  ;;  %v2258_v19 = vadd.f32 1.0, %v4377_v17  ;;  %v2751_v16 = vld [vmem:[%s5225_s1 + $0x10] sm:$0xff]  ;;  %v2750_v17 = vld [vmem:[%s5225_s1 + $0x8] sm:$0xff] }
 0x68d   : > { %v4379_v20 = vpop.eup %4378 }
 0x68e   : > { %4384 = vrcp.f32 %v2258_v19  ;;  %v2257_v46 = vadd.f32 1.0, %v4379_v20  ;;  %v2749_v19 = vld [vmem:[%s5225_s1] sm:$0xff]  ;;  %v2917_v20 = vld [vmem:[%s5226_s2 + $0x18] sm:$0xff]  ;;  %s5229_s1 = sld [smem:[#allocation4_spill]] }
 0x690   : > { %4386 = vrcp.f32 %v2257_v46  ;;  %v2915_v46 = vld [vmem:[%s5226_s2 + $0x8] sm:$0xff]  ;;  %s5230_s2 = sld [smem:[#allocation7_spill]] }
 0x697   : > { %v4381_v25 = vpop.eup %4380 }
 0x698   : > { %v2272_v28 = vsub.f32 1.0, %v4381_v25  ;;  %v2268_v31 = vmul.f32 %v4381_v25, %v2230_v27  ;;  %v3206_v27 = vld [vmem:[%s5228_s3 + $0x10] sm:$0xff] }
 0x699   : > { %v4383_v29 = vpop.eup %4382 }
 0x69a   : > { %v2276_v32 = vmul.f32 %v2272_v28, %v4855_v5  ;;  %v2271_v34 = vsub.f32 1.0, %v4383_v29  ;;  %v2267_v41 = vmul.f32 %v4383_v29, %v2225_v33  ;;  %v3205_v28 = vld [vmem:[%s5228_s3 + $0x8] sm:$0xff]  ;;  %v3204_v29 = vld [vmem:[%s5228_s3] sm:$0xff]  ;;  %s5231_s3 = sld [smem:[#allocation5_spill]] }
 0x69b   : > { %v4385_v37 = vpop.eup %4384  ;;  %v3333_v33 = vld [vmem:[%s4664_s29] sm:$0xff] }
 0x69c   : > { %v4915_v40 = vadd.f32 %v2276_v32, %v2268_v31  ;;  %v2275_v43 = vmul.f32 %v2271_v34, %v4858_v13  ;;  %v2274_v11 = vsub.f32 1.0, %v4385_v37  ;;  %v2270_v15 = vmul.f32 %v4385_v37, %v2240_v38  ;;  %v2286_v13 = vld [vmem:[#allocation2 + $0x70] sm:$0xff]  ;;  %v3334_v32 = vld [vmem:[%s4664_s29 + $0x8] sm:$0xff]  ;;  %v3462_v34 = vld [vmem:[%s4674_s6] sm:$0xff] }
 0x69d   : > { %v4387_v44 = vpop.eup %4386  ;;  %v3335_v31 = vld [vmem:[%s4664_s29 + $0x10] sm:$0xff]  ;;  %v3465_v38 = vld [vmem:[%s4674_s6 + $0x18] sm:$0xff] }
 0x69e   : > { %v4918_v48 = vadd.f32 %v2275_v43, %v2267_v41  ;;  %v2278_v5 = vmul.f32 %v2274_v11, %v4863_v18  ;;  %v2273_v52 = vsub.f32 1.0, %v4387_v44  ;;  %2309 = vst.msk [vmem:[#allocation2 + $0x68] sm:$0xff] %vm1047_vm0, %v4915_v40  ;;  %v2269_v51 = vmul.f32 %v4387_v44, %v2235_v45  ;;  %v3464_v37 = vld [vmem:[%s4674_s6 + $0x10] sm:$0xff]  ;;  %v2329_v44 = vld [vmem:[%s5220_s16 + $0x8] sm:$0xff] }
 0x69f   : > { %v2455_v45 = vld [vmem:[%s5221_s18 + $0x8] sm:$0xff] }
 0x6a0   : > { %v4923_v50 = vadd.f32 %v2278_v5, %v2270_v15  ;;  %v2277_v53 = vmul.f32 %v2273_v52, %v4868_v21  ;;  %2308 = vst.msk [vmem:[#allocation2 + $0x60] sm:$0xff] %vm1047_vm0, %v4918_v48  ;;  %v2456_v15 = vld [vmem:[%s5221_s18 + $0x10] sm:$0xff]  ;;  %v2331_v5 = vld [vmem:[%s5220_s16 + $0x18] sm:$0xff] }
 0x6a1   : > { %v2457_v52 = vld [vmem:[%s5221_s18 + $0x18] sm:$0xff] }
 0x6a2   : > { %v4928_v54 = vadd.f32 %v2277_v53, %v2269_v51  ;;  %2298 = vrot.lane.b32.xlu0 %v4923_v50, %s4499_s22  ;;  %4087 = vmatprep.subr.mxu0 %v4923_v50  ;;  %2311 = vst.msk [vmem:[#allocation2 + $0x78] sm:$0xff] %vm1047_vm0, %v4923_v50  ;;  %v2745_v51 = vld [vmem:[%s5230_s2] sm:$0xff] }
 0x6a3   : > { %4117 = vmatprep.subr.mxu1 %v4923_v50  ;;  %4088 = vmatpush3.msra.mxu0 %v4923_v50 }
 0x6a4   : > { %4118 = vmatpush3.msra.mxu1 %v4923_v50  ;;  %2296 = vrot.lane.b32.xlu1 %v4928_v54, %s4499_s22  ;;  %2310 = vst.msk [vmem:[#allocation2 + $0x70] sm:$0xff] %vm1047_vm0, %v4928_v54 }
 0x6a5   : > { %4089 = vmatprep.subr.mxu0 %v4928_v54  ;;  %4119 = vmatprep.subr.mxu1 %v4928_v54 }
 0x6a6   : > { %4090 = vmatpush3.msra.mxu0 %v4928_v54  ;;  %4120 = vmatpush3.msra.mxu1 %v4928_v54 }
 0x6a7   : > { %2294 = vrot.lane.b32.xlu0 %v4915_v40, %s4499_s22  ;;  %4091 = vmatprep.subr.mxu0 %v4915_v40 }
 0x6a8   : > { %4121 = vmatprep.subr.mxu1 %v4915_v40  ;;  %4092 = vmatpush3.msra.mxu0 %v4915_v40 }
 0x6a9   : > { %4122 = vmatpush3.msra.mxu1 %v4915_v40  ;;  %2292 = vrot.lane.b32.xlu1 %v4918_v48, %s4499_s22  ;;  %s5223_s22 = sld [smem:[#allocation15_spill]] }
 0x6aa   : > { %4093 = vmatprep.subr.mxu0 %v4918_v48  ;;  %4123 = vmatprep.subr.mxu1 %v4918_v48 }
 0x6ab   : > { %4094 = vmatpush3.msra.mxu0 %v4918_v48  ;;  %4124 = vmatpush3.msra.mxu1 %v4918_v48 }
 0x6af   : > { %v2461_v4 = vld [vmem:[%s5223_s22 + $0x18] sm:$0xff]  ;;  %v2460_v6 = vld [vmem:[%s5223_s22 + $0x10] sm:$0xff]  ;;  %v2459_v7 = vld [vmem:[%s5223_s22 + $0x8] sm:$0xff] }
 0x6b0   : > { %v2458_v8 = vld [vmem:[%s5223_s22] sm:$0xff] }
 0x714   : > { %v2299_v18 = vpop.permute.xlu0 %2298 }
 0x715   : > { %v4959_v21 = vsel %vm1047_vm0, %v2287_v60, %v2299_v18  ;;  %v2619_v60 = vld [vmem:[%s5229_s1] sm:$0xff] }
 0x716   : > { %2322 = vrot.lane.b32.xlu0 %v4959_v21, %s4505_s26  ;;  %v2297_v55 = vpop.permute.xlu1 %2296 }
 0x717   : > { %v4963_v56 = vsel %vm1047_vm0, %v2286_v13, %v2297_v55 }
 0x718   : > { %2320 = vrot.lane.b32.xlu1 %v4963_v56, %s4505_s26 }
 0x719   : > { %v2295_v57 = vpop.permute.xlu0 %2294 }
 0x71a   : > { %v4969_v61 = vsel %vm1047_vm0, %v2285_v39, %v2295_v57 }
 0x71b   : > { %2318 = vrot.lane.b32.xlu0 %v4969_v61, %s4505_s26  ;;  %v2293_v62 = vpop.permute.xlu1 %2292 }
 0x71c   : > { %v4975_v63 = vsel %vm1047_vm0, %v2284_v47, %v2293_v62  ;;  %v2330_v47 = vld [vmem:[%s5220_s16 + $0x10] sm:$0xff] }
 0x71d   : > { %2316 = vrot.lane.b32.xlu1 %v4975_v63, %s4505_s26  ;;  %s5227_s26 = sld [smem:[#allocation17_spill]] }
 0x71f   : > { %2353 = vperm.xlu0 %4338, %v2335_v0  }
 0x721   : > { %2348 = vperm.xlu1 %4339, %v2334_v1  }
 0x723   : > { %2343 = vperm.xlu0 %4338, %v2333_v2   ;;  %v3042_v22 = vld [vmem:[%s5227_s26 + $0x18] sm:$0xff]  ;;  %v3041_v23 = vld [vmem:[%s5227_s26 + $0x10] sm:$0xff]  ;;  %v3040_v24 = vld [vmem:[%s5227_s26 + $0x8] sm:$0xff] }
 0x724   : > { %v3039_v25 = vld [vmem:[%s5227_s26] sm:$0xff] }
 0x725   : > { %2338 = vperm.xlu1 %4339, %v2332_v3  }
 0x727   : > { %2479 = vperm.xlu0 %4338, %v2461_v4  }
 0x729   : > { %2474 = vperm.xlu1 %4339, %v2460_v6  }
 0x72b   : > { %2469 = vperm.xlu0 %4338, %v2459_v7  }
 0x72d   : > { %2464 = vperm.xlu1 %4339, %v2458_v8  }
 0x72f   : > { %2644 = vperm.xlu0 %4338, %v2626_v9  }
 0x731   : > { %2639 = vperm.xlu1 %4339, %v2625_v10  }
 0x733   : > { %2634 = vperm.xlu0 %4338, %v2624_v12  }
 0x735   : > { %2629 = vperm.xlu1 %4339, %v2623_v14  }
 0x737   : > { %2770 = vperm.xlu0 %4338, %v2752_v35  }
 0x739   : > { %2765 = vperm.xlu1 %4339, %v2751_v16  }
 0x73b   : > { %2760 = vperm.xlu0 %4338, %v2750_v17  }
 0x73d   : > { %2755 = vperm.xlu1 %4339, %v2749_v19  }
 0x73f   : > { %2935 = vperm.xlu0 %4338, %v2917_v20  }
 0x741   : > { %2930 = vperm.xlu1 %4339, %v2916_v42  }
 0x743   : > { %2925 = vperm.xlu0 %4338, %v2915_v46  }
 0x745   : > { %2920 = vperm.xlu1 %4339, %v2914_v49  }
 0x747   : > { %3060 = vperm.xlu0 %4338, %v3042_v22  }
 0x749   : > { %3055 = vperm.xlu1 %4339, %v3041_v23  }
 0x74b   : > { %3050 = vperm.xlu0 %4338, %v3040_v24  }
 0x74d   : > { %3045 = vperm.xlu1 %4339, %v3039_v25  }
 0x74f   : > { %3225 = vperm.xlu0 %4338, %v3207_v26  }
 0x751   : > { %3220 = vperm.xlu1 %4339, %v3206_v27  }
 0x753   : > { %3215 = vperm.xlu0 %4338, %v3205_v28  }
 0x755   : > { %3210 = vperm.xlu1 %4339, %v3204_v29  }
 0x757   : > { %3354 = vperm.xlu0 %4338, %v3336_v30  }
 0x759   : > { %3349 = vperm.xlu1 %4339, %v3335_v31  }
 0x75b   : > { %3344 = vperm.xlu0 %4338, %v3334_v32  }
 0x75d   : > { %3339 = vperm.xlu1 %4339, %v3333_v33  }
 0x75f   : > { %3468 = vperm.xlu0 %4338, %v3462_v34  }
 0x761   : > { %3473 = vperm.xlu1 %4339, %v3463_v36  }
 0x763   : > { %3478 = vperm.xlu0 %4338, %v3464_v37  }
 0x765   : > { %3483 = vperm.xlu1 %4339, %v3465_v38  }
 0x788   : > { %v2323_v39 = vpop.permute.xlu0 %2322 }
 0x789   : > { %4095 = vmatprep.subr.mxu0 %v2323_v39  ;;  %4125 = vmatprep.subr.mxu1 %v2323_v39 }
 0x78a   : > { %4096 = vmatpush3.msra.mxu0 %v2323_v39  ;;  %4126 = vmatpush3.msra.mxu1 %v2323_v39  ;;  %v2321_v41 = vpop.permute.xlu1 %2320 }
 0x78b   : > { %4097 = vmatprep.subr.mxu0 %v2321_v41  ;;  %4127 = vmatprep.subr.mxu1 %v2321_v41 }
 0x78c   : > { %4098 = vmatpush3.msra.mxu0 %v2321_v41  ;;  %4128 = vmatpush3.msra.mxu1 %v2321_v41 }
 0x78d   : > { %v2319_v43 = vpop.permute.xlu0 %2318 }
 0x78e   : > { %4099 = vmatprep.subr.mxu0 %v2319_v43  ;;  %4129 = vmatprep.subr.mxu1 %v2319_v43 }
 0x78f   : > { %4100 = vmatpush3.msra.mxu0 %v2319_v43  ;;  %4130 = vmatpush3.msra.mxu1 %v2319_v43  ;;  %v2317_v11 = vpop.permute.xlu1 %2316 }
 0x790   : > { %4101 = vmatprep.subr.mxu0 %v2317_v11  ;;  %4131 = vmatprep.subr.mxu1 %v2317_v11 }
 0x791   : > { %4102 = vmatpush3.msra.mxu0 %v2317_v11  ;;  %4132 = vmatpush3.msra.mxu1 %v2317_v11 }
 0x792   : > { %4103 = vmatprep.subr.mxu0 %v4959_v21  ;;  %4133 = vmatprep.subr.mxu1 %v4959_v21 }
 0x793   : > { %4104 = vmatpush3.msra.mxu0 %v4959_v21  ;;  %4134 = vmatpush3.msra.mxu1 %v4959_v21 }
 0x794   : > { %4105 = vmatprep.subr.mxu0 %v4963_v56  ;;  %4135 = vmatprep.subr.mxu1 %v4963_v56 }
 0x795   : > { %4106 = vmatpush3.msra.mxu0 %v4963_v56  ;;  %4136 = vmatpush3.msra.mxu1 %v4963_v56 }
 0x796   : > { %4107 = vmatprep.subr.mxu0 %v4969_v61  ;;  %4137 = vmatprep.subr.mxu1 %v4969_v61 }
 0x797   : > { %4108 = vmatpush3.msra.mxu0 %v4969_v61  ;;  %4138 = vmatpush3.msra.mxu1 %v4969_v61 }
 0x798   : > { %4109 = vmatprep.subr.mxu0 %v4975_v63  ;;  %4139 = vmatprep.subr.mxu1 %v4975_v63 }
 0x799   : > { %4110 = vmatpush3.msra.mxu0 %v4975_v63  ;;  %4140 = vmatpush3.msra.mxu1 %v4975_v63 }
 0x79a   : > { %4112 = vmatmul.mubr.msk.f32.vlgmr.msra.gmra.mxu0 %vm2356_vm2, %v2329_v44  ;;  %4142 = vmatmul.mubr.msk.f32.vlgmr.msra.gmra.mxu1 %vm2356_vm2, %v2455_v45  ;;  %v2354_v53 = vpop.permute.xlu0 %2353  ;;  %v2746_v45 = vld [vmem:[%s5230_s2 + $0x8] sm:$0xff] }
 0x79b   : > { %4114 = vmatprep.mubr.msk.f32.mxu0 %vm2356_vm2, %v2330_v47  ;;  %4144 = vmatprep.mubr.msk.f32.mxu1 %vm2356_vm2, %v2456_v15  ;;  %v2621_v47 = vld [vmem:[%s5229_s1 + $0x10] sm:$0xff] }
 0x79c   : > { %v2349_v13 = vpop.permute.xlu1 %2348  ;;  %v2747_v15 = vld [vmem:[%s5230_s2 + $0x10] sm:$0xff] }
 0x79e   : > { %4115 = vmatmul.mubr.msk.f32.gmra.mxu0 %vm2356_vm2, %v2331_v5  ;;  %4145 = vmatmul.mubr.msk.f32.gmra.mxu1 %vm2356_vm2, %v2457_v52  ;;  %v2344_v18 = vpop.permute.xlu0 %2343  ;;  %v2622_v5 = vld [vmem:[%s5229_s1 + $0x18] sm:$0xff] }
 0x79f   : > { %4155 = vmatprep.mubr.msk.f32.mxu0 %vm2647_vm3, %v2619_v60  ;;  %4169 = vmatprep.mubr.msk.f32.mxu1 %vm2647_vm3, %v2745_v51  ;;  %v2748_v52 = vld [vmem:[%s5230_s2 + $0x18] sm:$0xff]  ;;  %v2910_v60 = vld [vmem:[%s5231_s3] sm:$0xff]  ;;  %s5234_s2 = sld [smem:[#allocation20_spill]] }
 0x7a0   : > { %v2339_v56 = vpop.permute.xlu1 %2338  ;;  %v3035_v51 = vld [vmem:[%s5232_s4] sm:$0xff] }
 0x7a2   : > { %v2480_v19 = vpop.permute.xlu0 %2479 }
 0x7a4   : > { %v2475_v46 = vpop.permute.xlu1 %2474 }
 0x7a6   : > { %v2470_v28 = vpop.permute.xlu0 %2469 }
 0x7a8   : > { %v2465_v34 = vpop.permute.xlu1 %2464 }
 0x85a   : > { %v4113_v21 = vpop.f32.mrf.mxu0  ;;  %v4143_v14 = vpop.f32.mrf.mxu1 }
 0x85b   : > { %v2441_v55 = vadd.f32 %v4113_v21, %v2344_v18  ;;  %v2566_v33 = vadd.f32 %v4143_v14, %v2470_v28 }
 0x85c   : > { %v2435_v57 = vpop.f32.mrf.mxu0  ;;  %v2560_v16 = vpop.f32.mrf.mxu1 }
 0x85d   : > { %v3753_v58 = vmul.f32 -1.442695, %v2441_v55  ;;  %v2436_v59 = vadd.f32 %v2435_v57, %v2339_v56  ;;  %v2561_v41 = vadd.f32 %v2560_v16, %v2465_v34 }
 0x85e   : > { %v4116_v61 = vpop.f32.mrf.mxu0  ;;  %v4146_v17 = vpop.f32.mrf.mxu1 }
 0x85f   : > { %4388 = vpow2.f32 %v3753_v58  ;;  %v3752_v62 = vmul.f32 -1.442695, %v2436_v59  ;;  %v2451_v63 = vadd.f32 %v4116_v61, %v2354_v53  ;;  %v2576_v24 = vadd.f32 %v4146_v17, %v2480_v19  ;;  %v2645_v53 = vpop.permute.xlu0 %2644 }
 0x860   : > { %v2445_v0 = vpop.f32.mrf.mxu0  ;;  %v2570_v49 = vpop.f32.mrf.mxu1 }
 0x861   : > { %4390 = vpow2.f32 %v3752_v62  ;;  %v3755_v1 = vmul.f32 -1.442695, %v2451_v63  ;;  %v2446_v2 = vadd.f32 %v2445_v0, %v2349_v13  ;;  %v2571_v27 = vadd.f32 %v2570_v49, %v2475_v46  ;;  %v2640_v13 = vpop.permute.xlu1 %2639 }
 0x863   : > { %4392 = vpow2.f32 %v3755_v1  ;;  %v3754_v3 = vmul.f32 -1.442695, %v2446_v2  ;;  %v2635_v18 = vpop.permute.xlu0 %2634 }
 0x865   : > { %4394 = vpow2.f32 %v3754_v3  ;;  %v2630_v56 = vpop.permute.xlu1 %2629 }
 0x867   : > { %v2771_v19 = vpop.permute.xlu0 %2770 }
 0x869   : > { %v2766_v46 = vpop.permute.xlu1 %2765 }
 0x86b   : > { %v2761_v28 = vpop.permute.xlu0 %2760 }
 0x86c   : > { %v4389_v4 = vpop.eup %4388 }
 0x86d   : > { %v2592_v6 = vadd.f32 1.0, %v4389_v4  ;;  %v2756_v34 = vpop.permute.xlu1 %2755 }
 0x86e   : > { %v4391_v7 = vpop.eup %4390 }
 0x86f   : > { %v2591_v8 = vadd.f32 1.0, %v4391_v7  ;;  %4396 = vrcp.f32 %v2592_v6 }
 0x870   : > { %v4393_v9 = vpop.eup %4392 }
 0x871   : > { %v2594_v10 = vadd.f32 1.0, %v4393_v9  ;;  %4398 = vrcp.f32 %v2591_v8 }
 0x872   : > { %v4395_v12 = vpop.eup %4394 }
 0x873   : > { %4400 = vrcp.f32 %v2594_v10  ;;  %v2593_v35 = vadd.f32 1.0, %v4395_v12 }
 0x875   : > { %4402 = vrcp.f32 %v2593_v35 }
 0x87c   : > { %v4397_v20 = vpop.eup %4396 }
 0x87d   : > { %v2608_v23 = vsub.f32 1.0, %v4397_v20  ;;  %v2604_v43 = vmul.f32 %v4397_v20, %v2566_v33 }
 0x87e   : > { %v4399_v42 = vpop.eup %4398 }
 0x87f   : > { %v2607_v29 = vsub.f32 1.0, %v4399_v42  ;;  %v2612_v36 = vmul.f32 %v2608_v23, %v4915_v40 }
 0x880   : > { %v4401_v22 = vpop.eup %4400 }
 0x881   : > { %v2610_v25 = vsub.f32 1.0, %v4401_v22  ;;  %v2606_v30 = vmul.f32 %v4401_v22, %v2576_v24  ;;  %v2611_v11 = vmul.f32 %v2607_v29, %v4918_v48  ;;  %v5058_v40 = vadd.f32 %v2612_v36, %v2604_v43 }
 0x882   : > { %v4403_v26 = vpop.eup %4402 }
 0x883   : > { %v2614_v31 = vmul.f32 %v2610_v25, %v4923_v50  ;;  %v2609_v32 = vsub.f32 1.0, %v4403_v26  ;;  %v2605_v38 = vmul.f32 %v4403_v26, %v2571_v27  ;;  %v2603_v50 = vmul.f32 %v4399_v42, %v2561_v41 }
 0x885   : > { %v5048_v37 = vadd.f32 %v2614_v31, %v2606_v30  ;;  %v2613_v39 = vmul.f32 %v2609_v32, %v4928_v54  ;;  %v5064_v48 = vadd.f32 %v2611_v11, %v2603_v50  ;;  %v2620_v54 = vld [vmem:[%s5229_s1 + $0x8] sm:$0xff]  ;;  %s5233_s1 = sld [smem:[#allocation18_spill]] }
 0x887   : > { %v5052_v44 = vadd.f32 %v2613_v39, %v2605_v38  ;;  %4147 = vmatprep.subr.mxu0 %v5048_v37  ;;  %4161 = vmatprep.subr.mxu1 %v5048_v37 }
 0x888   : > { %4148 = vmatpush3.msra.mxu0 %v5048_v37  ;;  %4162 = vmatpush3.msra.mxu1 %v5048_v37 }
 0x889   : > { %4149 = vmatprep.subr.mxu0 %v5052_v44  ;;  %4163 = vmatprep.subr.mxu1 %v5052_v44 }
 0x88a   : > { %4150 = vmatpush3.msra.mxu0 %v5052_v44  ;;  %4164 = vmatpush3.msra.mxu1 %v5052_v44 }
 0x88b   : > { %4151 = vmatprep.subr.mxu0 %v5058_v40  ;;  %4165 = vmatprep.subr.mxu1 %v5058_v40 }
 0x88c   : > { %4152 = vmatpush3.msra.mxu0 %v5058_v40  ;;  %4166 = vmatpush3.msra.mxu1 %v5058_v40 }
 0x88d   : > { %4153 = vmatprep.subr.mxu0 %v5064_v48  ;;  %4167 = vmatprep.subr.mxu1 %v5064_v48 }
 0x88e   : > { %4154 = vmatpush3.msra.mxu0 %v5064_v48  ;;  %4168 = vmatpush3.msra.mxu1 %v5064_v48 }
 0x88f   : > { %4156 = vmatmul.mubr.msk.f32.vlgmr.msra.gmra.mxu0 %vm2647_vm3, %v2620_v54  ;;  %4170 = vmatmul.mubr.msk.f32.vlgmr.msra.gmra.mxu1 %vm2647_vm3, %v2746_v45  ;;  %v3036_v45 = vld [vmem:[%s5232_s4 + $0x8] sm:$0xff] }
 0x890   : > { %4158 = vmatprep.mubr.msk.f32.mxu0 %vm2647_vm3, %v2621_v47  ;;  %4172 = vmatprep.mubr.msk.f32.mxu1 %vm2647_vm3, %v2747_v15  ;;  %v2912_v47 = vld [vmem:[%s5231_s3 + $0x10] sm:$0xff] }
 0x891   : > { %v3037_v15 = vld [vmem:[%s5232_s4 + $0x10] sm:$0xff] }
 0x893   : > { %4159 = vmatmul.mubr.msk.f32.gmra.mxu0 %vm2647_vm3, %v2622_v5  ;;  %4173 = vmatmul.mubr.msk.f32.gmra.mxu1 %vm2647_vm3, %v2748_v52  ;;  %v2913_v5 = vld [vmem:[%s5231_s3 + $0x18] sm:$0xff] }
 0x894   : > { %4183 = vmatprep.mubr.msk.f32.mxu0 %vm2647_vm3, %v2910_v60  ;;  %4197 = vmatprep.mubr.msk.f32.mxu1 %vm2647_vm3, %v3035_v51  ;;  %v3038_v52 = vld [vmem:[%s5232_s4 + $0x18] sm:$0xff]  ;;  %v3200_v60 = vld [vmem:[%s5233_s1] sm:$0xff]  ;;  %v2936_v51 = vpop.permute.xlu0 %2935 }
 0x94f   : > { %v4157_v21 = vpop.f32.mrf.mxu0  ;;  %v4171_v14 = vpop.f32.mrf.mxu1 }
 0x950   : > { %v2732_v55 = vadd.f32 %v4157_v21, %v2635_v18  ;;  %v2857_v33 = vadd.f32 %v4171_v14, %v2761_v28 }
 0x951   : > { %v2726_v57 = vpop.f32.mrf.mxu0  ;;  %v2851_v16 = vpop.f32.mrf.mxu1 }
 0x952   : > { %v3765_v58 = vmul.f32 -1.442695, %v2732_v55  ;;  %v2727_v59 = vadd.f32 %v2726_v57, %v2630_v56  ;;  %v2852_v43 = vadd.f32 %v2851_v16, %v2756_v34 }
 0x953   : > { %v4160_v61 = vpop.f32.mrf.mxu0  ;;  %v4174_v17 = vpop.f32.mrf.mxu1 }
 0x954   : > { %4404 = vpow2.f32 %v3765_v58  ;;  %v3764_v62 = vmul.f32 -1.442695, %v2727_v59  ;;  %v2742_v63 = vadd.f32 %v4160_v61, %v2645_v53  ;;  %v2867_v24 = vadd.f32 %v4174_v17, %v2771_v19  ;;  %v2931_v53 = vpop.permute.xlu1 %2930 }
 0x955   : > { %v2736_v0 = vpop.f32.mrf.mxu0  ;;  %v2861_v49 = vpop.f32.mrf.mxu1 }
 0x956   : > { %4406 = vpow2.f32 %v3764_v62  ;;  %v3767_v1 = vmul.f32 -1.442695, %v2742_v63  ;;  %v2737_v2 = vadd.f32 %v2736_v0, %v2640_v13  ;;  %v2862_v27 = vadd.f32 %v2861_v49, %v2766_v46  ;;  %v2926_v13 = vpop.permute.xlu0 %2925 }
 0x958   : > { %4408 = vpow2.f32 %v3767_v1  ;;  %v3766_v3 = vmul.f32 -1.442695, %v2737_v2  ;;  %v2921_v55 = vpop.permute.xlu1 %2920 }
 0x95a   : > { %4410 = vpow2.f32 %v3766_v3  ;;  %v3061_v17 = vpop.permute.xlu0 %3060 }
 0x95c   : > { %v3056_v49 = vpop.permute.xlu1 %3055 }
 0x961   : > { %v4405_v4 = vpop.eup %4404 }
 0x962   : > { %v2883_v6 = vadd.f32 1.0, %v4405_v4 }
 0x963   : > { %v4407_v7 = vpop.eup %4406 }
 0x964   : > { %v2882_v8 = vadd.f32 1.0, %v4407_v7  ;;  %4412 = vrcp.f32 %v2883_v6 }
 0x965   : > { %v4409_v9 = vpop.eup %4408 }
 0x966   : > { %v2885_v10 = vadd.f32 1.0, %v4409_v9  ;;  %4414 = vrcp.f32 %v2882_v8 }
 0x967   : > { %v4411_v12 = vpop.eup %4410 }
 0x968   : > { %4416 = vrcp.f32 %v2885_v10  ;;  %v2884_v35 = vadd.f32 1.0, %v4411_v12 }
 0x96a   : > { %4418 = vrcp.f32 %v2884_v35 }
 0x971   : > { %v4413_v20 = vpop.eup %4412 }
 0x972   : > { %v2899_v23 = vsub.f32 1.0, %v4413_v20  ;;  %v2895_v11 = vmul.f32 %v4413_v20, %v2857_v33 }
 0x973   : > { %v4415_v42 = vpop.eup %4414 }
 0x974   : > { %v2898_v29 = vsub.f32 1.0, %v4415_v42  ;;  %v2903_v36 = vmul.f32 %v2899_v23, %v5058_v40 }
 0x975   : > { %v4417_v22 = vpop.eup %4416 }
 0x976   : > { %v2901_v25 = vsub.f32 1.0, %v4417_v22  ;;  %v2897_v30 = vmul.f32 %v4417_v22, %v2867_v24  ;;  %v2902_v50 = vmul.f32 %v2898_v29, %v5064_v48  ;;  %v2911_v48 = vld [vmem:[%s5231_s3 + $0x8] sm:$0xff] }
 0x977   : > { %v4419_v26 = vpop.eup %4418 }
 0x978   : > { %v2905_v31 = vmul.f32 %v2901_v25, %v5048_v37  ;;  %v2900_v32 = vsub.f32 1.0, %v4419_v26  ;;  %v2896_v39 = vmul.f32 %v4419_v26, %v2862_v27  ;;  %v5102_v37 = vadd.f32 %v2903_v36, %v2895_v11  ;;  %v3051_v27 = vpop.permute.xlu0 %3050 }
 0x97a   : > { %v5092_v38 = vadd.f32 %v2905_v31, %v2897_v30  ;;  %v2904_v41 = vmul.f32 %v2900_v32, %v5052_v44  ;;  %v2894_v44 = vmul.f32 %v4415_v42, %v2852_v43 }
 0x97c   : > { %v5096_v54 = vadd.f32 %v2904_v41, %v2896_v39  ;;  %4175 = vmatprep.subr.mxu0 %v5092_v38  ;;  %4189 = vmatprep.subr.mxu1 %v5092_v38  ;;  %v5108_v40 = vadd.f32 %v2902_v50, %v2894_v44  ;;  %v3046_v41 = vpop.permute.xlu1 %3045 }
 0x97d   : > { %4176 = vmatpush3.msra.mxu0 %v5092_v38  ;;  %4190 = vmatpush3.msra.mxu1 %v5092_v38 }
 0x97e   : > { %4177 = vmatprep.subr.mxu0 %v5096_v54  ;;  %4191 = vmatprep.subr.mxu1 %v5096_v54 }
 0x97f   : > { %4178 = vmatpush3.msra.mxu0 %v5096_v54  ;;  %4192 = vmatpush3.msra.mxu1 %v5096_v54 }
 0x980   : > { %4179 = vmatprep.subr.mxu0 %v5102_v37  ;;  %4193 = vmatprep.subr.mxu1 %v5102_v37 }
 0x981   : > { %4180 = vmatpush3.msra.mxu0 %v5102_v37  ;;  %4194 = vmatpush3.msra.mxu1 %v5102_v37 }
 0x982   : > { %4181 = vmatprep.subr.mxu0 %v5108_v40  ;;  %4195 = vmatprep.subr.mxu1 %v5108_v40 }
 0x983   : > { %4182 = vmatpush3.msra.mxu0 %v5108_v40  ;;  %4196 = vmatpush3.msra.mxu1 %v5108_v40 }
 0x984   : > { %4184 = vmatmul.mubr.msk.f32.vlgmr.msra.gmra.mxu0 %vm2647_vm3, %v2911_v48  ;;  %4198 = vmatmul.mubr.msk.f32.vlgmr.msra.gmra.mxu1 %vm2647_vm3, %v3036_v45  ;;  %v3201_v45 = vld [vmem:[%s5233_s1 + $0x8] sm:$0xff] }
 0x985   : > { %4186 = vmatprep.mubr.msk.f32.mxu0 %vm2647_vm3, %v2912_v47  ;;  %4200 = vmatprep.mubr.msk.f32.mxu1 %vm2647_vm3, %v3037_v15  ;;  %v3203_v47 = vld [vmem:[%s5233_s1 + $0x18] sm:$0xff]  ;;  %v3226_v15 = vpop.permute.xlu0 %3225 }
 0x988   : > { %4187 = vmatmul.mubr.msk.f32.gmra.mxu0 %vm2647_vm3, %v2913_v5  ;;  %4201 = vmatmul.mubr.msk.f32.gmra.mxu1 %vm2647_vm3, %v3038_v52  ;;  %v3221_v52 = vpop.permute.xlu1 %3220 }
 0x989   : > { %4211 = vmatprep.mubr.msk.f32.mxu0 %vm2647_vm3, %v3200_v60 }
 0xa44   : > { %v4185_v18 = vpop.f32.mrf.mxu0  ;;  %v4199_v12 = vpop.f32.mrf.mxu1 }
 0xa45   : > { %v3022_v21 = vadd.f32 %v4185_v18, %v2926_v13  ;;  %v3147_v32 = vadd.f32 %v4199_v12, %v3051_v27  ;;  %v3216_v13 = vpop.permute.xlu0 %3215 }
 0xa46   : > { %v3016_v56 = vpop.f32.mrf.mxu0  ;;  %v3141_v35 = vpop.f32.mrf.mxu1 }
 0xa47   : > { %v3777_v57 = vmul.f32 -1.442695, %v3022_v21  ;;  %v3017_v58 = vadd.f32 %v3016_v56, %v2921_v55  ;;  %v3142_v11 = vadd.f32 %v3141_v35, %v3046_v41 }
 0xa48   : > { %v4188_v59 = vpop.f32.mrf.mxu0  ;;  %v4202_v16 = vpop.f32.mrf.mxu1 }
 0xa49   : > { %4420 = vpow2.f32 %v3777_v57  ;;  %v3776_v61 = vmul.f32 -1.442695, %v3017_v58  ;;  %v3032_v62 = vadd.f32 %v4188_v59, %v2936_v51  ;;  %v3157_v22 = vadd.f32 %v4202_v16, %v3061_v17  ;;  %v3211_v57 = vpop.permute.xlu1 %3210 }
 0xa4a   : > { %v3026_v63 = vpop.f32.mrf.mxu0  ;;  %v3151_v42 = vpop.f32.mrf.mxu1 }
 0xa4b   : > { %4422 = vpow2.f32 %v3776_v61  ;;  %v3779_v0 = vmul.f32 -1.442695, %v3032_v62  ;;  %v3027_v1 = vadd.f32 %v3026_v63, %v2931_v53  ;;  %v3152_v26 = vadd.f32 %v3151_v42, %v3056_v49  ;;  %v3330_v63 = vld [vmem:[%s5234_s2 + $0x8] sm:$0xff] }
 0xa4d   : > { %4424 = vpow2.f32 %v3779_v0  ;;  %v3778_v2 = vmul.f32 -1.442695, %v3027_v1  ;;  %v3331_v0 = vld [vmem:[%s5234_s2 + $0x10] sm:$0xff]  ;;  %v3332_v1 = vld [vmem:[%s5234_s2 + $0x18] sm:$0xff] }
 0xa4f   : > { %4426 = vpow2.f32 %v3778_v2  ;;  %v3458_v2 = vld [vmem:[%s4669_s8] sm:$0xff] }
 0xa56   : > { %v4421_v3 = vpop.eup %4420 }
 0xa57   : > { %v3173_v4 = vadd.f32 1.0, %v4421_v3  ;;  %v3460_v3 = vld [vmem:[%s4669_s8 + $0x10] sm:$0xff] }
 0xa58   : > { %v4423_v6 = vpop.eup %4422 }
 0xa59   : > { %v3172_v7 = vadd.f32 1.0, %v4423_v6  ;;  %4428 = vrcp.f32 %v3173_v4  ;;  %v3355_v4 = vpop.permute.xlu0 %3354 }
 0xa5a   : > { %v4425_v8 = vpop.eup %4424 }
 0xa5b   : > { %v3175_v9 = vadd.f32 1.0, %v4425_v8  ;;  %4430 = vrcp.f32 %v3172_v7  ;;  %v3350_v7 = vpop.permute.xlu1 %3349 }
 0xa5c   : > { %v4427_v10 = vpop.eup %4426 }
 0xa5d   : > { %4432 = vrcp.f32 %v3175_v9  ;;  %v3174_v14 = vadd.f32 1.0, %v4427_v10  ;;  %v3345_v12 = vpop.permute.xlu0 %3344 }
 0xa5f   : > { %4434 = vrcp.f32 %v3174_v14 }
 0xa66   : > { %v4429_v19 = vpop.eup %4428 }
 0xa67   : > { %v3189_v24 = vsub.f32 1.0, %v4429_v19  ;;  %v3185_v43 = vmul.f32 %v4429_v19, %v3147_v32  ;;  %v3340_v19 = vpop.permute.xlu1 %3339 }
 0xa68   : > { %v4431_v20 = vpop.eup %4430 }
 0xa69   : > { %v3188_v31 = vsub.f32 1.0, %v4431_v20  ;;  %v3193_v39 = vmul.f32 %v3189_v24, %v5102_v37  ;;  %v3202_v37 = vld [vmem:[%s5233_s1 + $0x10] sm:$0xff]  ;;  %s3794_s1 = sshll.u32 %s5240_s7, 5 }
 0xa6a   : > { %v4433_v46 = vpop.eup %4432 }
 0xa6b   : > { %v3191_v23 = vsub.f32 1.0, %v4433_v46  ;;  %v3187_v28 = vmul.f32 %v4433_v46, %v3157_v22  ;;  %v3192_v44 = vmul.f32 %v3188_v31, %v5108_v40  ;;  %v3197_v48 = vadd.f32 %v3193_v39, %v3185_v43  ;;  %v3329_v40 = vld [vmem:[%s5234_s2] sm:$0xff]  ;;  %v3459_v22 = vld [vmem:[%s4669_s8 + $0x8] sm:$0xff]  ;;  %v3474_v24 = vpop.permute.xlu1 %3473  ;;  %s1042_s2 = scalar_lea.vmem %s4679_s30, %s3794_s1 }
 0xa6c   : > { %v4435_v25 = vpop.eup %4434  ;;  %4225 = vmatprep.mubr.msk.f32.mxu1 %vm2647_vm3, %v3329_v40 }
 0xa6d   : > { %v3195_v29 = vmul.f32 %v3191_v23, %v5092_v38  ;;  %v3190_v30 = vsub.f32 1.0, %v4435_v25  ;;  %v3186_v33 = vmul.f32 %v4435_v25, %v3152_v26  ;;  %v3184_v38 = vmul.f32 %v4431_v20, %v3142_v11  ;;  %v3461_v23 = vld [vmem:[%s4669_s8 + $0x18] sm:$0xff]  ;;  %v3469_v25 = vpop.permute.xlu0 %3468 }
 0xa6f   : > { %v3199_v34 = vadd.f32 %v3195_v29, %v3187_v28  ;;  %v3194_v36 = vmul.f32 %v3190_v30, %v5096_v54  ;;  %v3196_v54 = vadd.f32 %v3192_v44, %v3184_v38  ;;  %v3484_v26 = vpop.permute.xlu1 %3483 }
 0xa71   : > { %4203 = vmatprep.subr.mxu0 %v3199_v34  ;;  %v3198_v50 = vadd.f32 %v3194_v36, %v3186_v33  ;;  %v3479_v29 = vpop.permute.xlu0 %3478 }
 0xa72   : > { %4204 = vmatpush3.msra.mxu0 %v3199_v34 }
 0xa73   : > { %4205 = vmatprep.subr.mxu0 %v3198_v50 }
 0xa74   : > { %4206 = vmatpush3.msra.mxu0 %v3198_v50 }
 0xa75   : > { %4207 = vmatprep.subr.mxu0 %v3197_v48 }
 0xa76   : > { %4208 = vmatpush3.msra.mxu0 %v3197_v48 }
 0xa77   : > { %4209 = vmatprep.subr.mxu0 %v3196_v54 }
 0xa78   : > { %4210 = vmatpush3.msra.mxu0 %v3196_v54 }
 0xa79   : > { %4212 = vmatmul.mubr.msk.f32.vlgmr.msra.gmra.mxu0 %vm2647_vm3, %v3201_v45 }
 0xa7a   : > { %4214 = vmatprep.mubr.msk.f32.mxu0 %vm2647_vm3, %v3202_v37 }
 0xa7d   : > { %4215 = vmatmul.mubr.msk.f32.gmra.mxu0 %vm2647_vm3, %v3203_v47 }
 0xa7e   : > { %4239 = vmatprep.mubr.msk.f32.mxu0 %vm2647_vm3, %v3458_v2 }
 0xb39   : > { %v4213_v5 = vpop.f32.mrf.mxu0 }
 0xb3a   : > { %v3312_v21 = vadd.f32 %v4213_v5, %v3216_v13 }
 0xb3b   : > { %v3306_v60 = vpop.f32.mrf.mxu0 }
 0xb3c   : > { %v3307_v58 = vadd.f32 %v3306_v60, %v3211_v57  ;;  %v3326_v61 = vmax.f32 %v3312_v21, 0.0 }
 0xb3d   : > { %v4216_v51 = vpop.f32.mrf.mxu0 }
 0xb3e   : > { %v3322_v53 = vadd.f32 %v4216_v51, %v3226_v15  ;;  %v3325_v62 = vmax.f32 %v3307_v58, 0.0 }
 0xb3f   : > { %v3316_v18 = vpop.f32.mrf.mxu0 }
 0xb40   : > { %v3328_v55 = vmax.f32 %v3322_v53, 0.0  ;;  %v3317_v56 = vadd.f32 %v3316_v18, %v3221_v52 }
 0xb42   : > { %v3327_v59 = vmax.f32 %v3317_v56, 0.0  ;;  %4217 = vmatprep.subr.mxu1 %v3328_v55 }
 0xb43   : > { %4218 = vmatpush3.msra.mxu1 %v3328_v55 }
 0xb44   : > { %4219 = vmatprep.subr.mxu1 %v3327_v59 }
 0xb45   : > { %4220 = vmatpush3.msra.mxu1 %v3327_v59 }
 0xb46   : > { %4221 = vmatprep.subr.mxu1 %v3326_v61 }
 0xb47   : > { %4222 = vmatpush3.msra.mxu1 %v3326_v61 }
 0xb48   : > { %4223 = vmatprep.subr.mxu1 %v3325_v62 }
 0xb49   : > { %4224 = vmatpush3.msra.mxu1 %v3325_v62 }
 0xb4a   : > { %4226 = vmatmul.mubr.msk.f32.vlgmr.msra.gmra.mxu1 %vm2647_vm3, %v3330_v63 }
 0xb4b   : > { %4228 = vmatprep.mubr.msk.f32.mxu1 %vm2647_vm3, %v3331_v0 }
 0xb4e   : > { %4229 = vmatmul.mubr.msk.f32.gmra.mxu1 %vm2647_vm3, %v3332_v1 }
 0xb4f   : > { %4242 = vmatprep.mubr.msk.f32.mxu1 %vm2647_vm3, %v3460_v3 }
 0xc0a   : > { %v4227_v6 = vpop.f32.mrf.mxu1 }
 0xc0b   : > { %v3441_v35 = vadd.f32 %v4227_v6, %v3345_v12 }
 0xc0c   : > { %v3435_v8 = vpop.f32.mrf.mxu1 }
 0xc0d   : > { %v3436_v20 = vadd.f32 %v3435_v8, %v3340_v19  ;;  %v3455_v46 = vmax.f32 %v3441_v35, 0.0 }
 0xc0e   : > { %v4230_v9 = vpop.f32.mrf.mxu1 }
 0xc0f   : > { %v3451_v10 = vadd.f32 %v4230_v9, %v3355_v4  ;;  %v3454_v49 = vmax.f32 %v3436_v20, 0.0 }
 0xc10   : > { %v3445_v14 = vpop.f32.mrf.mxu1 }
 0xc11   : > { %v3457_v16 = vmax.f32 %v3451_v10, 0.0  ;;  %v3446_v17 = vadd.f32 %v3445_v14, %v3350_v7 }
 0xc13   : > { %v3456_v42 = vmax.f32 %v3446_v17, 0.0  ;;  %4231 = vmatprep.subr.mxu0 %v3457_v16  ;;  %4245 = vmatprep.subr.mxu1 %v3457_v16 }
 0xc14   : > { %4232 = vmatpush3.msra.mxu0 %v3457_v16  ;;  %4249 = vmatpush3.msra.mxu1 %v3457_v16 }
 0xc15   : > { %4233 = vmatprep.subr.mxu0 %v3456_v42  ;;  %4246 = vmatprep.subr.mxu1 %v3456_v42 }
 0xc16   : > { %4234 = vmatpush3.msra.mxu0 %v3456_v42  ;;  %4250 = vmatpush3.msra.mxu1 %v3456_v42 }
 0xc17   : > { %4235 = vmatprep.subr.mxu0 %v3455_v46  ;;  %4247 = vmatprep.subr.mxu1 %v3455_v46 }
 0xc18   : > { %4236 = vmatpush3.msra.mxu0 %v3455_v46  ;;  %4251 = vmatpush3.msra.mxu1 %v3455_v46 }
 0xc19   : > { %4237 = vmatprep.subr.mxu0 %v3454_v49  ;;  %4248 = vmatprep.subr.mxu1 %v3454_v49 }
 0xc1a   : > { %4238 = vmatpush3.msra.mxu0 %v3454_v49  ;;  %4252 = vmatpush3.msra.mxu1 %v3454_v49 }
 0xc1b   : > { %4240 = vmatmul.mubr.msk.f32.vlgmr.msra.gmra.mxu0 %vm2647_vm3, %v3459_v22  ;;  %4243 = vmatmul.mubr.msk.f32.vlgmr.msra.gmra.mxu1 %vm2647_vm3, %v3461_v23 }
 0xcdb   : > { %v4241_v27 = vpop.f32.mrf.mxu0  ;;  %v4244_v28 = vpop.f32.mrf.mxu1 }
 0xcdc   : > { %v3570_v30 = vadd.f32 %v4241_v27, %v3474_v24  ;;  %v3580_v31 = vadd.f32 %v4244_v28, %v3484_v26 }
 0xcdd   : > { %v3564_v32 = vpop.f32.mrf.mxu0  ;;  %v3574_v33 = vpop.f32.mrf.mxu1 }
 0xcde   : > { %3584 = vst.msk [vmem:[%s1042_s2 + $0x8] sm:$0xff] %vm1047_vm0, %v3570_v30  ;;  %3586 = vst.msk [vmem:[%s1042_s2 + $0x18] sm:$0xff] %vm1047_vm0, %v3580_v31  ;;  %v3565_v34 = vadd.f32 %v3564_v32, %v3469_v25  ;;  %v3575_v36 = vadd.f32 %v3574_v33, %v3479_v29 }
 0xce0   : > { %3583 = vst.msk [vmem:[%s1042_s2] sm:$0xff] %vm1047_vm0, %v3565_v34  ;;  %3585 = vst.msk [vmem:[%s1042_s2 + $0x10] sm:$0xff] %vm1047_vm0, %v3575_v36 }
 0xce1 PF: > { %s77_s11 = sadd.s32 1, %s4458_s11   ;;  %s5235_s7 = smov %s4454_s10 }
 0xce2   : > { %p74_p5 = scmp.ge.s32.totalorder %s77_s11, 4   ;;  %s5236_s10 = smov %s5238_s0 }
 0xce4   :  { %76 = sbr.rel (!%p74_p5) target bundleno = 54 (0x36), region = 222 }

</bundles_post_ra>
